<compile_context>
chip_gen: v5e
topology: v5e:2x2
jax: 0.10.0
libtpu: 0.0.40
codegen_flags: <defaults>
</compile_context>

<pallas_src>
import functools

import jax
import jax.numpy as jnp
from jax import lax
from jax.experimental import pallas as pl
from jax.experimental.pallas import tpu as pltpu


def _auto_class_tile(class_num: int) -> int:
    """Largest streaming class tile that divides class_num; resident otherwise."""
    if class_num % 128 == 0:
        for t in (512, 256, 128):
            if class_num % t == 0:
                return t
    # TODO(synk): pad class_num to a multiple of 128 (with -inf on the padding)
    # so huge, non-divisible class counts can also be streamed in tiles.
    return class_num


def _make_kernel(part: int, batch: int, tile_c: int, num_classes: int):
    """Kernel body, closing over all static sizes."""

    def kernel(img_ref, txt_ref, w_ref, b_ref, lab_ref, out_ref,
               xparts_sc, m_sc, l_sc, pick_sc):
        c = pl.program_id(0)
        lab = lab_ref[...]                                    # (B, 1) int32

        # ---- one-time init (first class tile) --------------------------------
        @pl.when(c == 0)
        def _init():
            pl.debug_check(jnp.all((lab >= 0) & (lab < num_classes)),
                           "IdentityLoss: label out of range")
            # Relayout PyTorch-convention (B, D, P) embeddings to part-major
            # (2P, B, D) once, in VMEM; later class tiles reuse the scratch.
            xi = img_ref[...]                                 # (B, D, P)
            xt = txt_ref[...]
            for p in range(part):
                xparts_sc[p] = xi[:, :, p]
                xparts_sc[part + p] = xt[:, :, p]
            m_sc[...] = jnp.full(m_sc.shape, -jnp.inf, jnp.float32)
            l_sc[...] = jnp.zeros(l_sc.shape, jnp.float32)
            pick_sc[...] = jnp.zeros(pick_sc.shape, jnp.float32)

        # ---- logits for this class tile --------------------------------------
        w = w_ref[...]                                        # (P, TC, D)
        b = b_ref[...].astype(jnp.float32)                    # (P, TC)
        xall = xparts_sc[...]                                 # (2P, B, D)

        rows = []
        for r in range(2 * part):                             # unrolled; part small
            q = r % part
            lp = lax.dot_general(xall[r], w[q],
                                 (((1,), (1,)), ((), ())),    # contract feature dim
                                 preferred_element_type=jnp.float32)
            rows.append(lp + b[q:q + 1, :])                   # (B, TC) f32
        logits = jnp.stack(rows, axis=0)                      # (2P, B, TC) f32

        # ---- online softmax + picked-logit accumulation ----------------------
        m_prev = m_sc[...]
        m_new = jnp.maximum(m_prev, jnp.max(logits, axis=-1, keepdims=True))
        alpha = jnp.exp(m_prev - m_new)
        l_sc[...] = alpha * l_sc[...] + jnp.sum(jnp.exp(logits - m_new),
                                                axis=-1, keepdims=True)
        m_sc[...] = m_new

        col = c * tile_c + lax.broadcasted_iota(jnp.int32, logits.shape, 2)
        match = col == lab[None, :, :]                        # (2P, B, TC) bool
        pick_sc[...] += jnp.sum(jnp.where(match, logits, 0.0),
                                axis=-1, keepdims=True)

        # ---- finalize on the last class tile ----------------------------------
        @pl.when(c == pl.num_programs(0) - 1)
        def _fin():
            nll = (m_sc[...] + jnp.log(l_sc[...])) - pick_sc[...]   # (2P, B, 1)
            out_ref[0, 0] = jnp.sum(nll) * (1.0 / (batch * part))

    return kernel


@functools.partial(jax.jit, static_argnames=("part", "class_tile"))
def identity_loss(image_emb, text_emb, label, weights, biases, *,
                  part, class_tile=None):
    """
    image_emb, text_emb : (B, feature_length, part)           (PyTorch layout)
    label               : (B,) int
    weights             : (part, class_num, feature_length)   (nn.Linear layout)
    biases              : (part, class_num)
    """
    B, D, P = image_emb.shape
    assert P == part and text_emb.shape == (B, D, P)
    C = weights.shape[1]
    assert weights.shape == (P, C, D) and biases.shape == (P, C)

    tile_c = class_tile if class_tile is not None else _auto_class_tile(C)
    assert C % tile_c == 0 and (tile_c == C or tile_c % 128 == 0)
    n_tiles = C // tile_c

    lab2 = label.reshape(B, 1).astype(jnp.int32)              # free reshape

    emb_b = image_emb.dtype.itemsize
    w_b = weights.dtype.itemsize
    est = (2 * 2 * B * D * P * emb_b                          # both slabs (+slack)
           + 2 * P * tile_c * D * w_b                         # double-buffered W tile
           + 2 * P * tile_c * biases.dtype.itemsize
           + 2 * P * B * D * emb_b                            # part-major scratch
           + 3 * 2 * P * B * 128 * 4                          # accumulators (padded)
           + 4 * 2 * P * B * max(tile_c, 128) * 4)            # logits/exp temporaries
    vmem_limit = int(min(64 * 2 ** 20, max(16 * 2 ** 20, 2 * est)))

    cost = pl.CostEstimate(
        flops=4 * P * B * C * D,
        transcendentals=2 * P * B * (C + 2),
        bytes_accessed=(2 * B * D * P * emb_b + P * C * D * w_b
                        + P * C * biases.dtype.itemsize + B * 4 + 4))

    out = pl.pallas_call(
        _make_kernel(P, B, tile_c, C),
        out_shape=jax.ShapeDtypeStruct((1, 1), jnp.float32),
        grid=(n_tiles,),
        in_specs=[
            pl.BlockSpec((B, D, P), lambda c: (0, 0, 0)),       # image (resident)
            pl.BlockSpec((B, D, P), lambda c: (0, 0, 0)),       # text  (resident)
            pl.BlockSpec((P, tile_c, D), lambda c: (0, c, 0)),  # streamed weights
            pl.BlockSpec((P, tile_c), lambda c: (0, c)),        # streamed biases
            pl.BlockSpec((B, 1), lambda c: (0, 0)),             # labels (resident)
        ],
        out_specs=pl.BlockSpec(memory_space=pltpu.MemorySpace.SMEM),
        scratch_shapes=[
            pltpu.VMEM((2 * P, B, D), image_emb.dtype),         # part-major embeds
            pltpu.VMEM((2 * P, B, 1), jnp.float32),             # running max
            pltpu.VMEM((2 * P, B, 1), jnp.float32),             # running sum-exp
            pltpu.VMEM((2 * P, B, 1), jnp.float32),             # picked logit
        ],
        compiler_params=pltpu.CompilerParams(
            dimension_semantics=("arbitrary",),                 # class reduction axis
            vmem_limit_bytes=vmem_limit),
        cost_estimate=cost,
    )(image_emb, text_emb, weights, biases, lab2)

    return out[0, 0]


def _reference_loss(image_emb, text_emb, label, weights, biases, part):
    """Pure-JAX reference matching the PyTorch forward."""
    label = label.reshape(-1)
    total = 0.0
    for i in range(part):
        for x in (image_emb[:, :, i], text_emb[:, :, i]):
            logits = (x.astype(jnp.float32) @ weights[i].astype(jnp.float32).T
                      + biases[i].astype(jnp.float32))
            logz = jax.nn.logsumexp(logits, axis=-1)
            nll = logz - jnp.take_along_axis(logits, label[:, None], axis=-1)[:, 0]
            total = total + jnp.mean(nll)
    return total / part


if __name__ == "__main__":
    # --- Test 1: module-faithful init (weights std=0.001, bias=0), one tile ----
    B, D, C, PART = 8, 32, 16, 2
    key = jax.random.PRNGKey(0)
    k1, k2, k3, k4 = jax.random.split(key, 4)
    image_emb = jax.random.normal(k1, (B, D, PART), dtype=jnp.float32)
    text_emb = jax.random.normal(k2, (B, D, PART), dtype=jnp.float32)
    label = jax.random.randint(k3, (B,), 0, C, dtype=jnp.int32)
    weights = 0.001 * jax.random.normal(k4, (PART, C, D), dtype=jnp.float32)
    biases = jnp.zeros((PART, C), dtype=jnp.float32)

    loss = jax.block_until_ready(
        identity_loss(image_emb, text_emb, label, weights, biases, part=PART))
    ref = _reference_loss(image_emb, text_emb, label, weights, biases, PART)
    assert jnp.allclose(loss, ref, rtol=1e-5, atol=1e-5), (loss, ref)

    # --- Test 2: multi-tile class streaming (online softmax across 2 tiles) ----
    B2, D2, C2, PART2 = 8, 32, 256, 3
    k5, k6, k7, k8, k9 = jax.random.split(jax.random.PRNGKey(1), 5)
    image_emb2 = jax.random.normal(k5, (B2, D2, PART2), dtype=jnp.float32)
    text_emb2 = jax.random.normal(k6, (B2, D2, PART2), dtype=jnp.float32)
    label2 = jax.random.randint(k7, (B2,), 0, C2, dtype=jnp.int32)
    weights2 = 0.5 * jax.random.normal(k8, (PART2, C2, D2), dtype=jnp.float32)
    biases2 = 0.1 * jax.random.normal(k9, (PART2, C2), dtype=jnp.float32)

    loss2 = jax.block_until_ready(
        identity_loss(image_emb2, text_emb2, label2, weights2, biases2,
                      part=PART2, class_tile=128))
    ref2 = _reference_loss(image_emb2, text_emb2, label2, weights2, biases2, PART2)
    assert jnp.allclose(loss2, ref2, rtol=1e-4, atol=1e-4), (loss2, ref2)

    print("KERNEL_OK")
</pallas_src>

<mosaic_0001>
module attributes {stable_mosaic.version = 11 : i64} {
  func.func @kernel(%arg0: i32, %arg1: memref<8x32x2xf32, #tpu.memory_space<vmem>>, %arg2: memref<8x32x2xf32, #tpu.memory_space<vmem>>, %arg3: memref<2x16x32xf32, #tpu.memory_space<vmem>>, %arg4: memref<2x16xf32, #tpu.memory_space<vmem>>, %arg5: memref<8x1xi32, #tpu.memory_space<vmem>>, %arg6: memref<1x1xf32, #tpu.memory_space<smem>>, %arg7: memref<4x8x32xf32, #tpu.memory_space<vmem>>, %arg8: memref<4x8x1xf32, #tpu.memory_space<vmem>>, %arg9: memref<4x8x1xf32, #tpu.memory_space<vmem>>, %arg10: memref<4x8x1xf32, #tpu.memory_space<vmem>>) attributes {dimension_semantics = [#tpu.dimension_semantics<arbitrary>], iteration_bounds = array<i64: 1>, scalar_prefetch = 0 : i64, scratch_operands = 4 : i64, tpu.core_type = #tpu.core_type<tc>, window_params = [{pipeline_mode = #tpu.pipeline_mode<synchronous>, transform_indices = @transform_0, window_bounds = array<i64: 8, 32, 2>}, {pipeline_mode = #tpu.pipeline_mode<synchronous>, transform_indices = @transform_1, window_bounds = array<i64: 8, 32, 2>}, {transform_indices = @transform_2, window_bounds = array<i64: 2, 16, 32>}, {transform_indices = @transform_3, window_bounds = array<i64: 2, 16>}, {pipeline_mode = #tpu.pipeline_mode<synchronous>, transform_indices = @transform_4, window_bounds = array<i64: 8, 1>}, {transform_indices = @transform_5, window_bounds = array<i64: 1, 1>}]} {
    %c0 = arith.constant 0 : index
    %c0_0 = arith.constant 0 : index
    %0 = vector.load %arg5[%c0, %c0_0] : memref<8x1xi32, #tpu.memory_space<vmem>>, vector<8x1xi32>
    %c0_i32 = arith.constant 0 : i32
    %1 = arith.cmpi eq, %arg0, %c0_i32 : i32
    %2 = arith.extui %1 : i1 to i32
    %c0_i32_1 = arith.constant 0 : i32
    %3 = arith.cmpi ne, %2, %c0_i32_1 : i32
    scf.if %3 {
      %c0_i32_37 = arith.constant 0 : i32
      %77 = vector.broadcast %c0_i32_37 : i32 to vector<8x1xi32>
      %78 = arith.cmpi sge, %0, %77 : vector<8x1xi32>
      %c16_i32_38 = arith.constant 16 : i32
      %79 = vector.broadcast %c16_i32_38 : i32 to vector<8x1xi32>
      %80 = arith.cmpi slt, %0, %79 : vector<8x1xi32>
      %81 = arith.andi %78, %80 : vector<8x1xi1>
      %cst_39 = arith.constant 1.000000e+00 : f32
      %cst_40 = arith.constant 0.000000e+00 : f32
      %82 = vector.broadcast %cst_39 : f32 to vector<8x1xf32>
      %83 = vector.broadcast %cst_40 : f32 to vector<8x1xf32>
      %84 = arith.select %81, %82, %83 : vector<8x1xi1>, vector<8x1xf32>
      %85 = vector.shape_cast %84 : vector<8x1xf32> to vector<1x8x1xf32>
      %cst_41 = arith.constant dense<0x7F800000> : vector<1xf32>
      %86 = vector.multi_reduction <minimumf>, %85, %cst_41 [1, 2] : vector<1x8x1xf32> to vector<1xf32>
      %87 = vector.shape_cast %86 : vector<1xf32> to vector<1x1x1xf32>
      %88 = vector.extract %87[0, 0, 0] : f32 from vector<1x1x1xf32>
      %cst_42 = arith.constant 0.000000e+00 : f32
      %89 = arith.cmpf ogt, %88, %cst_42 : f32
      %true = arith.constant true
      %90 = arith.xori %89, %true : i1
      %false = arith.constant false
      %91 = arith.ori %false, %90 : i1
      %false_43 = arith.constant false
      %c1_i32 = arith.constant 1 : i32
      %c-1_i32 = arith.constant -1 : i32
      %92 = arith.select %false_43, %c-1_i32, %c1_i32 : i32
      %c0_44 = arith.constant 0 : index
      %c0_45 = arith.constant 0 : index
      %c0_46 = arith.constant 0 : index
      %93 = vector.load %arg1[%c0_44, %c0_45, %c0_46] : memref<8x32x2xf32, #tpu.memory_space<vmem>>, vector<8x32x2xf32>
      %c0_47 = arith.constant 0 : index
      %c0_48 = arith.constant 0 : index
      %c0_49 = arith.constant 0 : index
      %94 = vector.load %arg2[%c0_47, %c0_48, %c0_49] : memref<8x32x2xf32, #tpu.memory_space<vmem>>, vector<8x32x2xf32>
      %95 = vector.extract_strided_slice %93 {offsets = [0, 0, 0], sizes = [8, 32, 1], strides = [1, 1, 1]} : vector<8x32x2xf32> to vector<8x32x1xf32>
      %96 = vector.shape_cast %95 : vector<8x32x1xf32> to vector<8x32xf32>
      %c0_50 = arith.constant 0 : index
      %c0_51 = arith.constant 0 : index
      %c0_52 = arith.constant 0 : index
      %97 = vector.load %arg7[%c0_50, %c0_51, %c0_52] : memref<4x8x32xf32, #tpu.memory_space<vmem>>, vector<1x8x32xf32>
      %98 = vector.shape_cast %97 : vector<1x8x32xf32> to vector<8x32xf32>
      %99 = vector.shape_cast %96 : vector<8x32xf32> to vector<1x8x32xf32>
      tpu.vector_store %arg7[%c0_50, %c0_51, %c0_52], %99 {strides = array<i32>} : memref<4x8x32xf32, #tpu.memory_space<vmem>>, vector<1x8x32xf32>,
      %100 = vector.extract_strided_slice %94 {offsets = [0, 0, 0], sizes = [8, 32, 1], strides = [1, 1, 1]} : vector<8x32x2xf32> to vector<8x32x1xf32>
      %101 = vector.shape_cast %100 : vector<8x32x1xf32> to vector<8x32xf32>
      %c2 = arith.constant 2 : index
      %c0_53 = arith.constant 0 : index
      %c0_54 = arith.constant 0 : index
      %102 = vector.load %arg7[%c2, %c0_53, %c0_54] : memref<4x8x32xf32, #tpu.memory_space<vmem>>, vector<1x8x32xf32>
      %103 = vector.shape_cast %102 : vector<1x8x32xf32> to vector<8x32xf32>
      %104 = vector.shape_cast %101 : vector<8x32xf32> to vector<1x8x32xf32>
      tpu.vector_store %arg7[%c2, %c0_53, %c0_54], %104 {strides = array<i32>} : memref<4x8x32xf32, #tpu.memory_space<vmem>>, vector<1x8x32xf32>,
      %105 = vector.extract_strided_slice %93 {offsets = [0, 0, 1], sizes = [8, 32, 1], strides = [1, 1, 1]} : vector<8x32x2xf32> to vector<8x32x1xf32>
      %106 = vector.shape_cast %105 : vector<8x32x1xf32> to vector<8x32xf32>
      %c1 = arith.constant 1 : index
      %c0_55 = arith.constant 0 : index
      %c0_56 = arith.constant 0 : index
      %107 = vector.load %arg7[%c1, %c0_55, %c0_56] : memref<4x8x32xf32, #tpu.memory_space<vmem>>, vector<1x8x32xf32>
      %108 = vector.shape_cast %107 : vector<1x8x32xf32> to vector<8x32xf32>
      %109 = vector.shape_cast %106 : vector<8x32xf32> to vector<1x8x32xf32>
      tpu.vector_store %arg7[%c1, %c0_55, %c0_56], %109 {strides = array<i32>} : memref<4x8x32xf32, #tpu.memory_space<vmem>>, vector<1x8x32xf32>,
      %110 = vector.extract_strided_slice %94 {offsets = [0, 0, 1], sizes = [8, 32, 1], strides = [1, 1, 1]} : vector<8x32x2xf32> to vector<8x32x1xf32>
      %111 = vector.shape_cast %110 : vector<8x32x1xf32> to vector<8x32xf32>
      %c3 = arith.constant 3 : index
      %c0_57 = arith.constant 0 : index
      %c0_58 = arith.constant 0 : index
      %112 = vector.load %arg7[%c3, %c0_57, %c0_58] : memref<4x8x32xf32, #tpu.memory_space<vmem>>, vector<1x8x32xf32>
      %113 = vector.shape_cast %112 : vector<1x8x32xf32> to vector<8x32xf32>
      %114 = vector.shape_cast %111 : vector<8x32xf32> to vector<1x8x32xf32>
      tpu.vector_store %arg7[%c3, %c0_57, %c0_58], %114 {strides = array<i32>} : memref<4x8x32xf32, #tpu.memory_space<vmem>>, vector<1x8x32xf32>,
      %cst_59 = arith.constant 0xFF800000 : f32
      %115 = vector.broadcast %cst_59 : f32 to vector<4x8x1xf32>
      %c0_60 = arith.constant 0 : index
      %c0_61 = arith.constant 0 : index
      %c0_62 = arith.constant 0 : index
      %116 = vector.load %arg8[%c0_60, %c0_61, %c0_62] : memref<4x8x1xf32, #tpu.memory_space<vmem>>, vector<4x8x1xf32>
      tpu.vector_store %arg8[%c0_60, %c0_61, %c0_62], %115 {strides = array<i32>} : memref<4x8x1xf32, #tpu.memory_space<vmem>>, vector<4x8x1xf32>,
      %cst_63 = arith.constant 0.000000e+00 : f32
      %117 = vector.broadcast %cst_63 : f32 to vector<4x8x1xf32>
      %c0_64 = arith.constant 0 : index
      %c0_65 = arith.constant 0 : index
      %c0_66 = arith.constant 0 : index
      %118 = vector.load %arg9[%c0_64, %c0_65, %c0_66] : memref<4x8x1xf32, #tpu.memory_space<vmem>>, vector<4x8x1xf32>
      tpu.vector_store %arg9[%c0_64, %c0_65, %c0_66], %117 {strides = array<i32>} : memref<4x8x1xf32, #tpu.memory_space<vmem>>, vector<4x8x1xf32>,
      %cst_67 = arith.constant 0.000000e+00 : f32
      %119 = vector.broadcast %cst_67 : f32 to vector<4x8x1xf32>
      %c0_68 = arith.constant 0 : index
      %c0_69 = arith.constant 0 : index
      %c0_70 = arith.constant 0 : index
      %120 = vector.load %arg10[%c0_68, %c0_69, %c0_70] : memref<4x8x1xf32, #tpu.memory_space<vmem>>, vector<4x8x1xf32>
      tpu.vector_store %arg10[%c0_68, %c0_69, %c0_70], %119 {strides = array<i32>} : memref<4x8x1xf32, #tpu.memory_space<vmem>>, vector<4x8x1xf32>,
    } else {
    }
    %c0_2 = arith.constant 0 : index
    %c0_3 = arith.constant 0 : index
    %c0_4 = arith.constant 0 : index
    %4 = vector.load %arg3[%c0_2, %c0_3, %c0_4] : memref<2x16x32xf32, #tpu.memory_space<vmem>>, vector<2x16x32xf32>
    %c0_5 = arith.constant 0 : index
    %c0_6 = arith.constant 0 : index
    %5 = vector.load %arg4[%c0_5, %c0_6] : memref<2x16xf32, #tpu.memory_space<vmem>>, vector<2x16xf32>
    %c0_7 = arith.constant 0 : index
    %c0_8 = arith.constant 0 : index
    %c0_9 = arith.constant 0 : index
    %6 = vector.load %arg7[%c0_7, %c0_8, %c0_9] : memref<4x8x32xf32, #tpu.memory_space<vmem>>, vector<4x8x32xf32>
    %7 = vector.extract_strided_slice %6 {offsets = [0, 0, 0], sizes = [1, 8, 32], strides = [1, 1, 1]} : vector<4x8x32xf32> to vector<1x8x32xf32>
    %8 = vector.shape_cast %7 : vector<1x8x32xf32> to vector<8x32xf32>
    %9 = vector.extract_strided_slice %4 {offsets = [0, 0, 0], sizes = [1, 16, 32], strides = [1, 1, 1]} : vector<2x16x32xf32> to vector<1x16x32xf32>
    %10 = vector.shape_cast %9 : vector<1x16x32xf32> to vector<16x32xf32>
    %cst = arith.constant dense<0.000000e+00> : vector<8x16xf32>
    %11 = tpu.matmul %8, %10, %cst {dimension_numbers = #tpu.dot_dimension_numbers<[1], [1], [0], [0], [0, 0, 1, 0], [], []>} : vector<8x32xf32>, vector<16x32xf32>, vector<8x16xf32> -> vector<8x16xf32>
    %12 = vector.extract_strided_slice %5 {offsets = [0, 0], sizes = [1, 16], strides = [1, 1]} : vector<2x16xf32> to vector<1x16xf32>
    %13 = vector.broadcast %12 : vector<1x16xf32> to vector<8x16xf32>
    %14 = arith.addf %11, %13 : vector<8x16xf32>
    %15 = vector.extract_strided_slice %6 {offsets = [1, 0, 0], sizes = [1, 8, 32], strides = [1, 1, 1]} : vector<4x8x32xf32> to vector<1x8x32xf32>
    %16 = vector.shape_cast %15 : vector<1x8x32xf32> to vector<8x32xf32>
    %17 = vector.extract_strided_slice %4 {offsets = [1, 0, 0], sizes = [1, 16, 32], strides = [1, 1, 1]} : vector<2x16x32xf32> to vector<1x16x32xf32>
    %18 = vector.shape_cast %17 : vector<1x16x32xf32> to vector<16x32xf32>
    %cst_10 = arith.constant dense<0.000000e+00> : vector<8x16xf32>
    %19 = tpu.matmul %16, %18, %cst_10 {dimension_numbers = #tpu.dot_dimension_numbers<[1], [1], [0], [0], [0, 0, 1, 0], [], []>} : vector<8x32xf32>, vector<16x32xf32>, vector<8x16xf32> -> vector<8x16xf32>
    %20 = vector.extract_strided_slice %5 {offsets = [1, 0], sizes = [1, 16], strides = [1, 1]} : vector<2x16xf32> to vector<1x16xf32>
    %21 = vector.broadcast %20 : vector<1x16xf32> to vector<8x16xf32>
    %22 = arith.addf %19, %21 : vector<8x16xf32>
    %23 = vector.extract_strided_slice %6 {offsets = [2, 0, 0], sizes = [1, 8, 32], strides = [1, 1, 1]} : vector<4x8x32xf32> to vector<1x8x32xf32>
    %24 = vector.shape_cast %23 : vector<1x8x32xf32> to vector<8x32xf32>
    %25 = vector.extract_strided_slice %4 {offsets = [0, 0, 0], sizes = [1, 16, 32], strides = [1, 1, 1]} : vector<2x16x32xf32> to vector<1x16x32xf32>
    %26 = vector.shape_cast %25 : vector<1x16x32xf32> to vector<16x32xf32>
    %cst_11 = arith.constant dense<0.000000e+00> : vector<8x16xf32>
    %27 = tpu.matmul %24, %26, %cst_11 {dimension_numbers = #tpu.dot_dimension_numbers<[1], [1], [0], [0], [0, 0, 1, 0], [], []>} : vector<8x32xf32>, vector<16x32xf32>, vector<8x16xf32> -> vector<8x16xf32>
    %28 = vector.extract_strided_slice %5 {offsets = [0, 0], sizes = [1, 16], strides = [1, 1]} : vector<2x16xf32> to vector<1x16xf32>
    %29 = vector.broadcast %28 : vector<1x16xf32> to vector<8x16xf32>
    %30 = arith.addf %27, %29 : vector<8x16xf32>
    %31 = vector.extract_strided_slice %6 {offsets = [3, 0, 0], sizes = [1, 8, 32], strides = [1, 1, 1]} : vector<4x8x32xf32> to vector<1x8x32xf32>
    %32 = vector.shape_cast %31 : vector<1x8x32xf32> to vector<8x32xf32>
    %33 = vector.extract_strided_slice %4 {offsets = [1, 0, 0], sizes = [1, 16, 32], strides = [1, 1, 1]} : vector<2x16x32xf32> to vector<1x16x32xf32>
    %34 = vector.shape_cast %33 : vector<1x16x32xf32> to vector<16x32xf32>
    %cst_12 = arith.constant dense<0.000000e+00> : vector<8x16xf32>
    %35 = tpu.matmul %32, %34, %cst_12 {dimension_numbers = #tpu.dot_dimension_numbers<[1], [1], [0], [0], [0, 0, 1, 0], [], []>} : vector<8x32xf32>, vector<16x32xf32>, vector<8x16xf32> -> vector<8x16xf32>
    %36 = vector.extract_strided_slice %5 {offsets = [1, 0], sizes = [1, 16], strides = [1, 1]} : vector<2x16xf32> to vector<1x16xf32>
    %37 = vector.broadcast %36 : vector<1x16xf32> to vector<8x16xf32>
    %38 = arith.addf %35, %37 : vector<8x16xf32>
    %39 = vector.shape_cast %14 : vector<8x16xf32> to vector<1x8x16xf32>
    %40 = vector.shape_cast %22 : vector<8x16xf32> to vector<1x8x16xf32>
    %41 = vector.shape_cast %30 : vector<8x16xf32> to vector<1x8x16xf32>
    %42 = vector.shape_cast %38 : vector<8x16xf32> to vector<1x8x16xf32>
    %43 = tpu.concatenate %39, %40, %41, %42 in 0 : vector<1x8x16xf32>, vector<1x8x16xf32>, vector<1x8x16xf32>, vector<1x8x16xf32> -> vector<4x8x16xf32>
    %c0_13 = arith.constant 0 : index
    %c0_14 = arith.constant 0 : index
    %c0_15 = arith.constant 0 : index
    %44 = vector.load %arg8[%c0_13, %c0_14, %c0_15] : memref<4x8x1xf32, #tpu.memory_space<vmem>>, vector<4x8x1xf32>
    %cst_16 = arith.constant dense<0xFF800000> : vector<4x8xf32>
    %45 = vector.multi_reduction <maximumf>, %43, %cst_16 [2] : vector<4x8x16xf32> to vector<4x8xf32>
    %46 = vector.shape_cast %45 : vector<4x8xf32> to vector<4x8x1xf32>
    %47 = arith.maximumf %44, %46 : vector<4x8x1xf32>
    %48 = arith.subf %44, %47 : vector<4x8x1xf32>
    %49 = math.exp %48 : vector<4x8x1xf32>
    %c0_17 = arith.constant 0 : index
    %c0_18 = arith.constant 0 : index
    %c0_19 = arith.constant 0 : index
    %50 = vector.load %arg9[%c0_17, %c0_18, %c0_19] : memref<4x8x1xf32, #tpu.memory_space<vmem>>, vector<4x8x1xf32>
    %51 = arith.mulf %49, %50 : vector<4x8x1xf32>
    %52 = vector.broadcast %47 : vector<4x8x1xf32> to vector<4x8x16xf32>
    %53 = arith.subf %43, %52 : vector<4x8x16xf32>
    %54 = math.exp %53 : vector<4x8x16xf32>
    %cst_20 = arith.constant dense<0.000000e+00> : vector<4x8xf32>
    %55 = vector.multi_reduction <add>, %54, %cst_20 [2] : vector<4x8x16xf32> to vector<4x8xf32>
    %56 = vector.shape_cast %55 : vector<4x8xf32> to vector<4x8x1xf32>
    %57 = arith.addf %51, %56 : vector<4x8x1xf32>
    %c0_21 = arith.constant 0 : index
    %c0_22 = arith.constant 0 : index
    %c0_23 = arith.constant 0 : index
    %58 = vector.load %arg9[%c0_21, %c0_22, %c0_23] : memref<4x8x1xf32, #tpu.memory_space<vmem>>, vector<4x8x1xf32>
    tpu.vector_store %arg9[%c0_21, %c0_22, %c0_23], %57 {strides = array<i32>} : memref<4x8x1xf32, #tpu.memory_space<vmem>>, vector<4x8x1xf32>,
    %c0_24 = arith.constant 0 : index
    %c0_25 = arith.constant 0 : index
    %c0_26 = arith.constant 0 : index
    %59 = vector.load %arg8[%c0_24, %c0_25, %c0_26] : memref<4x8x1xf32, #tpu.memory_space<vmem>>, vector<4x8x1xf32>
    tpu.vector_store %arg8[%c0_24, %c0_25, %c0_26], %47 {strides = array<i32>} : memref<4x8x1xf32, #tpu.memory_space<vmem>>, vector<4x8x1xf32>,
    %c16_i32 = arith.constant 16 : i32
    %60 = arith.muli %arg0, %c16_i32 : i32
    %61 = tpu.iota {dimensions = array<i32: 2>} : vector<4x8x16xi32>
    %62 = vector.broadcast %60 : i32 to vector<4x8x16xi32>
    %63 = arith.addi %62, %61 : vector<4x8x16xi32>
    %64 = vector.shape_cast %0 : vector<8x1xi32> to vector<1x8x1xi32>
    %65 = vector.broadcast %64 : vector<1x8x1xi32> to vector<4x8x16xi32>
    %66 = arith.cmpi eq, %63, %65 : vector<4x8x16xi32>
    %c0_27 = arith.constant 0 : index
    %c0_28 = arith.constant 0 : index
    %c0_29 = arith.constant 0 : index
    %67 = vector.load %arg10[%c0_27, %c0_28, %c0_29] : memref<4x8x1xf32, #tpu.memory_space<vmem>>, vector<4x8x1xf32>
    %cst_30 = arith.constant 0.000000e+00 : f32
    %68 = vector.broadcast %cst_30 : f32 to vector<4x8x16xf32>
    %69 = arith.select %66, %43, %68 : vector<4x8x16xi1>, vector<4x8x16xf32>
    %cst_31 = arith.constant dense<0.000000e+00> : vector<4x8xf32>
    %70 = vector.multi_reduction <add>, %69, %cst_31 [2] : vector<4x8x16xf32> to vector<4x8xf32>
    %71 = vector.shape_cast %70 : vector<4x8xf32> to vector<4x8x1xf32>
    %72 = arith.addf %67, %71 : vector<4x8x1xf32>
    %c0_32 = arith.constant 0 : index
    %c0_33 = arith.constant 0 : index
    %c0_34 = arith.constant 0 : index
    %73 = vector.load %arg10[%c0_32, %c0_33, %c0_34] : memref<4x8x1xf32, #tpu.memory_space<vmem>>, vector<4x8x1xf32>
    tpu.vector_store %arg10[%c0_32, %c0_33, %c0_34], %72 {strides = array<i32>} : memref<4x8x1xf32, #tpu.memory_space<vmem>>, vector<4x8x1xf32>,
    %c0_i32_35 = arith.constant 0 : i32
    %74 = arith.cmpi eq, %arg0, %c0_i32_35 : i32
    %75 = arith.extui %74 : i1 to i32
    %c0_i32_36 = arith.constant 0 : i32
    %76 = arith.cmpi ne, %75, %c0_i32_36 : i32
    scf.if %76 {
      %c0_37 = arith.constant 0 : index
      %c0_38 = arith.constant 0 : index
      %c0_39 = arith.constant 0 : index
      %77 = vector.load %arg8[%c0_37, %c0_38, %c0_39] : memref<4x8x1xf32, #tpu.memory_space<vmem>>, vector<4x8x1xf32>
      %c0_40 = arith.constant 0 : index
      %c0_41 = arith.constant 0 : index
      %c0_42 = arith.constant 0 : index
      %78 = vector.load %arg9[%c0_40, %c0_41, %c0_42] : memref<4x8x1xf32, #tpu.memory_space<vmem>>, vector<4x8x1xf32>
      %79 = math.log %78 : vector<4x8x1xf32>
      %80 = arith.addf %77, %79 : vector<4x8x1xf32>
      %c0_43 = arith.constant 0 : index
      %c0_44 = arith.constant 0 : index
      %c0_45 = arith.constant 0 : index
      %81 = vector.load %arg10[%c0_43, %c0_44, %c0_45] : memref<4x8x1xf32, #tpu.memory_space<vmem>>, vector<4x8x1xf32>
      %82 = arith.subf %80, %81 : vector<4x8x1xf32>
      %83 = vector.shape_cast %82 : vector<4x8x1xf32> to vector<1x4x8x1xf32>
      %cst_46 = arith.constant dense<0.000000e+00> : vector<1xf32>
      %84 = vector.multi_reduction <add>, %83, %cst_46 [1, 2, 3] : vector<1x4x8x1xf32> to vector<1xf32>
      %85 = vector.shape_cast %84 : vector<1xf32> to vector<1x1x1x1xf32>
      %86 = vector.extract %85[0, 0, 0, 0] : f32 from vector<1x1x1x1xf32>
      %cst_47 = arith.constant 6.250000e-02 : f32
      %87 = arith.mulf %86, %cst_47 : f32
      %c0_48 = arith.constant 0 : index
      %c0_49 = arith.constant 0 : index
      %88 = memref.load %arg6[%c0_48, %c0_49] : memref<1x1xf32, #tpu.memory_space<smem>>
      memref.store %87, %arg6[%c0_48, %c0_49] : memref<1x1xf32, #tpu.memory_space<smem>>
    } else {
    }
    return
  }
  func.func @transform_0(%arg0: i32) -> (i32, i32, i32) {
    %c0_i32 = arith.constant 0 : i32
    %c0_i32_0 = arith.constant 0 : i32
    %c0_i32_1 = arith.constant 0 : i32
    %c0_i32_2 = arith.constant 0 : i32
    return %c0_i32, %c0_i32_0, %c0_i32_1 : i32, i32, i32
  }
  func.func @transform_1(%arg0: i32) -> (i32, i32, i32) {
    %c0_i32 = arith.constant 0 : i32
    %c0_i32_0 = arith.constant 0 : i32
    %c0_i32_1 = arith.constant 0 : i32
    %c0_i32_2 = arith.constant 0 : i32
    return %c0_i32, %c0_i32_0, %c0_i32_1 : i32, i32, i32
  }
  func.func @transform_2(%arg0: i32) -> (i32, i32, i32) {
    %c0_i32 = arith.constant 0 : i32
    %c0_i32_0 = arith.constant 0 : i32
    %c0_i32_1 = arith.constant 0 : i32
    return %c0_i32, %arg0, %c0_i32_0 : i32, i32, i32
  }
  func.func @transform_3(%arg0: i32) -> (i32, i32) {
    %c0_i32 = arith.constant 0 : i32
    %c0_i32_0 = arith.constant 0 : i32
    return %c0_i32, %arg0 : i32, i32
  }
  func.func @transform_4(%arg0: i32) -> (i32, i32) {
    %c0_i32 = arith.constant 0 : i32
    %c0_i32_0 = arith.constant 0 : i32
    %c0_i32_1 = arith.constant 0 : i32
    return %c0_i32, %c0_i32_0 : i32, i32
  }
  func.func @transform_5(%arg0: i32) -> (i32, i32) {
    %c0_i32 = arith.constant 0 : i32
    %c0_i32_0 = arith.constant 0 : i32
    %c0_i32_1 = arith.constant 0 : i32
    return %c0_i32, %c0_i32_0 : i32, i32
  }
}

</mosaic_0001>

<bundles_post_ra>
// kernel: identity_loss.1
= control target key start
LH: loop header
LB: loop body
LE: loop exit
PB: predicated region body
PF: predicated region fallthrough
CT: control target
= control target key end

     0   :  { %v2196_v3 = vmov 0   ;;  %s2190_s0 = inlined_call_operand.vmem [shape: f32[8,32,2], index: 0, kind: input, shape index: {}]   ;;  %s2191_s1 = inlined_call_operand.vmem [shape: f32[8,32,2], index: 1, kind: input, shape index: {}]   ;;  %s2192_s2 = inlined_call_operand.vmem [shape: f32[2,16,32], index: 2, kind: input, shape index: {}]   ;;  %s2193_s3 = inlined_call_operand.vmem [shape: f32[2,16], index: 3, kind: input, shape index: {}]   ;;  %s2194_s4 = inlined_call_operand.vmem [shape: s32[8,1], index: 4, kind: input, shape index: {}]   ;;  %s2195_s5 = inlined_call_operand.hbm [shape: f32[1,1], index: 5, kind: output, shape index: {}]  }
   0x1   :  { %v1250_v0 = vld [vmem:[%s2190_s0 + $0x20] sm:$0xff]  ;;  %v1255_v1 = vld [vmem:[%s2190_s0 + $0x10] sm:$0xff]  ;;  %1167 = vset.pattern.permute.xlu2 %v2196_v3  ;;  %1166 = vset.pattern.permute.xlu1 %v2196_v3 }
   0x2   :  { %v1260_v2 = vld [vmem:[%s2190_s0] sm:$0xff]  ;;  %1165 = vset.pattern.permute.xlu0 %v2196_v3  ;;  %135 = vperm.xlu2 %1167, %v1250_v0  }
   0x3   :  { %129 = vperm.xlu1 %1166, %v1255_v1   ;;  %123 = vperm.xlu0 %1165, %v1260_v2  }
   0x4   :  { %10 = vsyncpa [#allocation7], 0  ;;  %v1271_v4 = vld [vmem:[%s2190_s0 + $0x28] sm:$0xff]  ;;  %v1276_v5 = vld [vmem:[%s2190_s0 + $0x18] sm:$0xff]  ;;  %v218_v49 = vlaneseq  ;;  %vm227_vm0 = vcmask 195712   ;;  %vm223_vm1 = vcmask 130112  }
   0x5   :  { %v1281_v6 = vld [vmem:[%s2190_s0 + $0x8] sm:$0xff]  ;;  %v1289_v7 = vld [vmem:[%s2190_s0 + $0x40] sm:$0xff]  ;;  %v1294_v8 = vld [vmem:[%s2190_s0 + $0x38] sm:$0xff]  ;;  %vm231_vm2 = vcmask 261312   ;;  %vm282_vm3 = vcmask 1041409   ;;  %vm284_vm4 = vcmask 1042434  }
   0x6   :  { %v1299_v9 = vld [vmem:[%s2190_s0 + $0x30] sm:$0xff]  ;;  %v1307_v10 = vld [vmem:[%s2190_s0 + $0x58] sm:$0xff]  ;;  %v1317_v12 = vld [vmem:[%s2190_s0 + $0x48] sm:$0xff]  ;;  %v1526_v53 = vand.u32 127, %v218_v49  ;;  %vm297_vm5 = vcmask 261120   ;;  %vm286_vm6 = vcmask 1043459  }
   0x7   :  { %v1312_v11 = vld [vmem:[%s2190_s0 + $0x50] sm:$0xff]  ;;  %v1330_v14 = vld [vmem:[%s2190_s0 + $0x68] sm:$0xff]  ;;  %v1335_v15 = vld [vmem:[%s2190_s0 + $0x60] sm:$0xff]  ;;  %vm288_vm7 = vcmask 1044484   ;;  %vm290_vm8 = vcmask 1045509   ;;  %vm292_vm9 = vcmask 1046534  }
   0x8   :  { %v1325_v13 = vld [vmem:[%s2190_s0 + $0x70] sm:$0xff]  ;;  %v1343_v16 = vld [vmem:[%s2190_s0 + $0x88] sm:$0xff]  ;;  %v1348_v17 = vld [vmem:[%s2190_s0 + $0x80] sm:$0xff]  ;;  %v1545_v57 = vadd.s32 4294967280, %v1526_v53  ;;  %v1550_v58 = vadd.s32 4294967288, %v1526_v53  ;;  %v1556_v63 = vadd.s32 4294967272, %v1526_v53 }
   0x9   :  { %2225 = vst [vmem:[#allocation9_spill] sm:$0xff] %v1343_v16  ;;  %v1353_v18 = vld [vmem:[%s2190_s0 + $0x78] sm:$0xff]  ;;  %v1361_v19 = vld [vmem:[%s2190_s0 + $0xa0] sm:$0xff]  ;;  %v1371_v21 = vld [vmem:[%s2190_s0 + $0x90] sm:$0xff]  ;;  %vm294_vm10 = vcmask 1047559   ;;  %vm950_vm11 = vcmask 130048  }
   0xa   :  { %138 = vperm.xlu2 %1167, %v1271_v4   ;;  %2226 = vst [vmem:[#allocation10_spill] sm:$0xff] %v1353_v18  ;;  %v1366_v20 = vld [vmem:[%s2190_s0 + $0x98] sm:$0xff]  ;;  %v1384_v23 = vld [vmem:[%s2190_s0 + $0xb0] sm:$0xff]  ;;  %v1389_v24 = vld [vmem:[%s2190_s0 + $0xa8] sm:$0xff]  ;;  %vm817_vm12 = vcmask 7168   ;;  %s1136_s28 = sshll.u32 %s2195_s5, 4  ;;  %s1137_s28 = int_to_ptr.hbm [resolvable:$true] %s1136_s28 }
   0xb   :  { %132 = vperm.xlu1 %1166, %v1276_v5   ;;  %126 = vperm.xlu0 %1165, %v1281_v6   ;;  %2227 = vst [vmem:[#allocation11_spill] sm:$0xff] %v1361_v19  ;;  %v1379_v22 = vld [vmem:[%s2190_s0 + $0xb8] sm:$0xff]  ;;  %v1397_v25 = vld [vmem:[%s2190_s0 + $0xd0] sm:$0xff]  ;;  %v1402_v26 = vld [vmem:[%s2190_s0 + $0xc8] sm:$0xff]  ;;  %s1216_s6 = smov [#allocation6]  }
   0xc   :  { %2228 = vst [vmem:[#allocation12_spill] sm:$0xff] %v1366_v20  ;;  %v1407_v27 = vld [vmem:[%s2190_s0 + $0xc0] sm:$0xff]  ;;  %v1415_v28 = vld [vmem:[%s2190_s0 + $0xe8] sm:$0xff]  ;;  %v1425_v30 = vld [vmem:[%s2190_s0 + $0xd8] sm:$0xff] }
   0xd   :  { %2229 = vst [vmem:[#allocation13_spill] sm:$0xff] %v1371_v21  ;;  %v1420_v29 = vld [vmem:[%s2190_s0 + $0xe0] sm:$0xff]  ;;  %v1438_v32 = vld [vmem:[%s2190_s0 + $0xf8] sm:$0xff]  ;;  %v1443_v33 = vld [vmem:[%s2190_s0 + $0xf0] sm:$0xff] }
   0xe   :  { %2230 = vst [vmem:[#allocation14_spill] sm:$0xff] %v1379_v22  ;;  %v1433_v31 = vld [vmem:[%s2191_s1] sm:$0xff]  ;;  %v1451_v34 = vld [vmem:[%s2191_s1 + $0x18] sm:$0xff]  ;;  %v1456_v35 = vld [vmem:[%s2191_s1 + $0x10] sm:$0xff] }
   0xf   :  { %2231 = vst [vmem:[#allocation15_spill] sm:$0xff] %v1384_v23  ;;  %v1461_v36 = vld [vmem:[%s2191_s1 + $0x8] sm:$0xff]  ;;  %v1471_v38 = vld [vmem:[%s2191_s1 + $0x30] sm:$0xff]  ;;  %v1481_v40 = vld [vmem:[%s2191_s1 + $0x20] sm:$0xff] }
  0x10   :  { %2232 = vst [vmem:[#allocation16_spill] sm:$0xff] %v1389_v24  ;;  %v1476_v39 = vld [vmem:[%s2191_s1 + $0x28] sm:$0xff]  ;;  %v1494_v43 = vld [vmem:[%s2191_s1 + $0x40] sm:$0xff]  ;;  %v1499_v44 = vld [vmem:[%s2191_s1 + $0x38] sm:$0xff] }
  0x11   :  { %2233 = vst [vmem:[#allocation17_spill] sm:$0xff] %v1397_v25  ;;  %v1489_v42 = vld [vmem:[%s2191_s1 + $0x48] sm:$0xff]  ;;  %v1509_v46 = vld [vmem:[%s2191_s1 + $0x60] sm:$0xff]  ;;  %v1514_v47 = vld [vmem:[%s2191_s1 + $0x58] sm:$0xff] }
  0x12   :  { %147 = vperm.xlu2 %1167, %v1289_v7   ;;  %2234 = vst [vmem:[#allocation18_spill] sm:$0xff] %v1402_v26  ;;  %v1519_v48 = vld [vmem:[%s2191_s1 + $0x50] sm:$0xff]  ;;  %v1531_v54 = vld [vmem:[%s2191_s1 + $0x78] sm:$0xff]  ;;  %v1541_v56 = vld [vmem:[%s2191_s1 + $0x68] sm:$0xff] }
  0x13   :  { %144 = vperm.xlu1 %1166, %v1294_v8   ;;  %141 = vperm.xlu0 %1165, %v1299_v9   ;;  %2235 = vst [vmem:[#allocation19_spill] sm:$0xff] %v1407_v27  ;;  %v1536_v55 = vld [vmem:[%s2191_s1 + $0x70] sm:$0xff] }
  0x14   :  { %2236 = vst [vmem:[#allocation20_spill] sm:$0xff] %v1415_v28 }
  0x15   :  { %2237 = vst [vmem:[#allocation21_spill] sm:$0xff] %v1420_v29 }
  0x16   :  { %2238 = vst [vmem:[#allocation22_spill] sm:$0xff] %v1425_v30 }
  0x17   :  { %2239 = vst [vmem:[#allocation23_spill] sm:$0xff] %v1438_v32 }
  0x18   :  { %2240 = vst [vmem:[#allocation24_spill] sm:$0xff] %v1443_v33 }
  0x1a   :  { %156 = vperm.xlu2 %1167, %v1307_v10  }
  0x1b   :  { %153 = vperm.xlu1 %1166, %v1312_v11   ;;  %150 = vperm.xlu0 %1165, %v1317_v12  }
  0x22   :  { %165 = vperm.xlu2 %1167, %v1325_v13  }
  0x23   :  { %162 = vperm.xlu1 %1166, %v1330_v14   ;;  %159 = vperm.xlu0 %1165, %v1335_v15  }
  0x2a   :  { %174 = vperm.xlu2 %1167, %v1343_v16  }
  0x2b   :  { %171 = vperm.xlu1 %1166, %v1348_v17   ;;  %168 = vperm.xlu0 %1165, %v1353_v18  }
  0x32   :  { %183 = vperm.xlu2 %1167, %v1361_v19  }
  0x33   :  { %180 = vperm.xlu1 %1166, %v1366_v20   ;;  %177 = vperm.xlu0 %1165, %v1371_v21   ;;  %v1690_v21 = vld [vmem:[%s2191_s1 + $0xf8] sm:$0xff] }
  0x34   :  { %2251 = vst [vmem:[#allocation35_spill] sm:$0xff] %v1690_v21 }
  0x3a   :  { %192 = vperm.xlu2 %1167, %v1379_v22  }
  0x3b   :  { %189 = vperm.xlu1 %1166, %v1384_v23   ;;  %186 = vperm.xlu0 %1165, %v1389_v24   ;;  %v1648_v23 = vld [vmem:[%s2191_s1 + $0xd8] sm:$0xff] }
  0x3c   :  { %2245 = vst [vmem:[#allocation29_spill] sm:$0xff] %v1648_v23 }
  0x42   :  { %201 = vperm.xlu2 %1167, %v1397_v25  }
  0x43   :  { %198 = vperm.xlu1 %1166, %v1402_v26   ;;  %195 = vperm.xlu0 %1165, %v1407_v27  }
  0x4a   :  { %210 = vperm.xlu2 %1167, %v1415_v28  }
  0x4b   :  { %207 = vperm.xlu1 %1166, %v1420_v29   ;;  %204 = vperm.xlu0 %1165, %v1425_v30   ;;  %v1570_v30 = vld [vmem:[%s2191_s1 + $0x88] sm:$0xff] }
  0x52   :  { %332 = vperm.xlu2 %1167, %v1433_v31  }
  0x53   :  { %216 = vperm.xlu1 %1166, %v1438_v32   ;;  %213 = vperm.xlu0 %1165, %v1443_v33   ;;  %v1563_v33 = vld [vmem:[%s2191_s1 + $0x90] sm:$0xff] }
  0x5a   :  { %341 = vperm.xlu2 %1167, %v1451_v34  }
  0x5b   :  { %338 = vperm.xlu1 %1166, %v1456_v35   ;;  %335 = vperm.xlu0 %1165, %v1461_v36  }
  0x5c   :  { %v1466_v37 = vpop.permute.xlu2 %135 }
  0x62   :  { %350 = vperm.xlu2 %1167, %v1471_v38  }
  0x63   :  { %347 = vperm.xlu1 %1166, %v1476_v39   ;;  %344 = vperm.xlu0 %1165, %v1481_v40  }
  0x64   :  { %v139_v41 = vpop.permute.xlu2 %138 }
  0x6a   :  { %359 = vperm.xlu2 %1167, %v1489_v42  }
  0x6b   :  { %356 = vperm.xlu1 %1166, %v1494_v43   ;;  %353 = vperm.xlu0 %1165, %v1499_v44  }
  0x6c   :  { %v1504_v45 = vpop.permute.xlu2 %147 }
  0x72   :  { %368 = vperm.xlu2 %1167, %v1509_v46  }
  0x73   :  { %365 = vperm.xlu1 %1166, %v1514_v47   ;;  %362 = vperm.xlu0 %1165, %v1519_v48  }
  0x74   :  { %v1524_v50 = vpop.permute.xlu2 %156 }
  0x75   :  { %v130_v51 = vpop.permute.xlu1 %129  ;;  %v124_v52 = vpop.permute.xlu0 %123 }
  0x76   :  { %v220_v59 = vperm.slane %v124_v52, %v1526_v53  ;;  %v226_v3 = vperm.slane %v130_v51, %v1545_v57 }
  0x7a   :  { %377 = vperm.xlu2 %1167, %v1531_v54  }
  0x7b   :  { %374 = vperm.xlu1 %1166, %v1536_v55   ;;  %371 = vperm.xlu0 %1165, %v1541_v56  }
  0x7c   :  { %v1553_v60 = vpop.permute.xlu2 %165 }
  0x7d   :  { %v133_v61 = vpop.permute.xlu1 %132  ;;  %v127_v62 = vpop.permute.xlu0 %126 }
  0x7e   :  { %v222_v49 = vperm.slane %v127_v62, %v1550_v58  ;;  %v230_v52 = vperm.slane %v133_v61, %v1556_v63  ;;  %v1575_v62 = vld [vmem:[%s2191_s1 + $0x80] sm:$0xff]  ;;  %v233_v61 = vperm.slane %v1466_v37, %v1526_v53  ;;  %v1593_v37 = vld [vmem:[%s2191_s1 + $0xa8] sm:$0xff] }
  0x80   :  { %v224_v32 = vsel %vm223_vm1, %v222_v49, %v220_v59  ;;  %v234_v59 = vperm.slane %v139_v41, %v1550_v58 }
  0x81   :  { %v228_v51 = vsel %vm227_vm0, %v226_v3, %v224_v32 }
  0x82   :  { %v232_v28 = vsel %vm231_vm2, %v230_v52, %v228_v51  ;;  %386 = vperm.xlu2 %1167, %v1563_v33   ;;  %v235_v32 = vsel %vm223_vm1, %v234_v59, %v233_v61  ;;  %v1599_v52 = vld [vmem:[%s2191_s1 + $0xa0] sm:$0xff] }
  0x83   :  { %383 = vperm.xlu1 %1166, %v1570_v30   ;;  %380 = vperm.xlu0 %1165, %v1575_v62  }
  0x84   :  { %v1585_v49 = vpop.permute.xlu2 %174 }
  0x85   :  { %v145_v29 = vpop.permute.xlu1 %144  ;;  %v142_v22 = vpop.permute.xlu0 %141 }
  0x86   :  { %v238_v25 = vperm.slane %v145_v29, %v1556_v63  ;;  %v236_v3 = vperm.slane %v142_v22, %v1545_v57  ;;  %v1604_v29 = vld [vmem:[%s2191_s1 + $0x98] sm:$0xff] }
  0x87   :  { %2241 = vst [vmem:[#allocation25_spill] sm:$0xff] %v1604_v29 }
  0x88   :  { %v237_v41 = vsel %vm227_vm0, %v236_v3, %v235_v32  ;;  %v240_v32 = vperm.slane %v1504_v45, %v1526_v53  ;;  %v1633_v45 = vld [vmem:[%s2191_s1 + $0xb0] sm:$0xff] }
  0x89   :  { %v239_v22 = vsel %vm231_vm2, %v238_v25, %v237_v41  ;;  %v1620_v25 = vld [vmem:[%s2191_s1 + $0xc0] sm:$0xff]  ;;  %2244 = vst [vmem:[#allocation28_spill] sm:$0xff] %v1633_v45 }
  0x8a   :  { %v283_v51 = vsel %vm282_vm3, %v239_v22, %v232_v28  ;;  %395 = vperm.xlu2 %1167, %v1593_v37   ;;  %2242 = vst [vmem:[#allocation26_spill] sm:$0xff] %v1620_v25  ;;  %v245_v28 = vperm.slane %v1524_v50, %v1556_v63  ;;  %v1628_v22 = vld [vmem:[%s2191_s1 + $0xb8] sm:$0xff] }
  0x8b   :  { %392 = vperm.xlu1 %1166, %v1599_v52   ;;  %389 = vperm.xlu0 %1165, %v1604_v29   ;;  %2243 = vst [vmem:[#allocation27_spill] sm:$0xff] %v1628_v22 }
  0x8c   :  { %v1611_v61 = vpop.permute.xlu2 %183 }
  0x8d   :  { %v154_v59 = vpop.permute.xlu1 %153  ;;  %v151_v3 = vpop.permute.xlu0 %150 }
  0x8e   :  { %v243_v26 = vperm.slane %v154_v59, %v1545_v57  ;;  %v241_v27 = vperm.slane %v151_v3, %v1550_v58 }
  0x90   :  { %v242_v41 = vsel %vm223_vm1, %v241_v27, %v240_v32 }
  0x91   :  { %v244_v59 = vsel %vm227_vm0, %v243_v26, %v242_v41  ;;  %v1653_v26 = vld [vmem:[%s2191_s1 + $0xd0] sm:$0xff] }
  0x92   :  { %v246_v3 = vsel %vm231_vm2, %v245_v28, %v244_v59  ;;  %404 = vperm.xlu2 %1167, %v1620_v25   ;;  %2246 = vst [vmem:[#allocation30_spill] sm:$0xff] %v1653_v26  ;;  %v1658_v28 = vld [vmem:[%s2191_s1 + $0xc8] sm:$0xff] }
  0x93   :  { %401 = vperm.xlu1 %1166, %v1628_v22   ;;  %398 = vperm.xlu0 %1165, %v1633_v45   ;;  %v1641_v27 = vsel %vm284_vm4, %v246_v3, %v283_v51  ;;  %2247 = vst [vmem:[#allocation31_spill] sm:$0xff] %v1658_v28  ;;  %v1670_v3 = vld [vmem:[%s2191_s1 + $0xf0] sm:$0xff]  ;;  %v1675_v22 = vld [vmem:[%s2191_s1 + $0xe8] sm:$0xff] }
  0x94   :  { %v1643_v50 = vpop.permute.xlu2 %192  ;;  %2248 = vst [vmem:[#allocation32_spill] sm:$0xff] %v1670_v3 }
  0x95   :  { %v163_v32 = vpop.permute.xlu1 %162  ;;  %v160_v20 = vpop.permute.xlu0 %159  ;;  %2249 = vst [vmem:[#allocation33_spill] sm:$0xff] %v1675_v22 }
  0x96   :  { %v247_v29 = vperm.slane %v160_v20, %v1526_v53 }
  0x9a   :  { %413 = vperm.xlu2 %1167, %v1648_v23   ;;  %v1680_v23 = vld [vmem:[%s2191_s1 + $0xe0] sm:$0xff] }
  0x9b   :  { %410 = vperm.xlu1 %1166, %v1653_v26   ;;  %407 = vperm.xlu0 %1165, %v1658_v28   ;;  %2250 = vst [vmem:[#allocation34_spill] sm:$0xff] %v1680_v23  ;;  %v1213_v28 = vmov 1  }
  0x9c   :  { %v1663_v51 = vpop.permute.xlu2 %201 }
  0x9d   :  { %v172_v41 = vpop.permute.xlu1 %171  ;;  %v1665_v59 = vpop.permute.xlu0 %168 }
  0x9e   :  { %v254_v16 = vperm.slane %v172_v41, %v1526_v53 }
  0xa2   :  { %422 = vperm.xlu2 %1167, %v1670_v3   ;;  %v831_v3 = vld [vmem:[%s2192_s2 + $0x8] sm:$0xff] }
  0xa3   :  { %419 = vperm.xlu1 %1166, %v1675_v22   ;;  %416 = vperm.xlu0 %1165, %v1680_v23  }
  0xa4   :  { %v1685_v26 = vpop.permute.xlu2 %210  ;;  %1146 = vmatpush.xpose.msk.msra.mxu0 %vm297_vm5, %v831_v3  ;;  %1152 = vmatpush.xpose.msk.msra.mxu2 %vm297_vm5, %v831_v3  ;;  %v248_v3 = vperm.slane %v163_v32, %v1550_v58 }
  0xa5   :  { %v181_v19 = vpop.permute.xlu1 %180  ;;  %v178_v24 = vpop.permute.xlu0 %177 }
  0xaa   :  { %1169 = vset.pattern.permute.xlu2 %v1213_v28 }
  0xab   :  { %1168 = vset.pattern.permute.xlu1 %v1213_v28  ;;  %425 = vperm.xlu0 %1165, %v1690_v21   ;;  %v830_v21 = vld [vmem:[%s2192_s2] sm:$0xff] }
  0xac   :  { %497 = vperm.xlu2 %1169, %v1281_v6   ;;  %494 = vperm.xlu1 %1168, %v1260_v2   ;;  %v1698_v22 = vpop.permute.xlu2 %332 }
  0xad   :  { %v190_v23 = vpop.permute.xlu1 %189  ;;  %v187_v18 = vpop.permute.xlu0 %186  ;;  %1147 = vmatpush.xpose.msk.msra.mxu0 %vm297_vm5, %v830_v21  ;;  %1153 = vmatpush.xpose.msk.msra.mxu2 %vm297_vm5, %v830_v21 }
  0xae   :  { %v262_v45 = vperm.slane %v187_v18, %v1550_v58  ;;  %v255_v18 = vperm.slane %v1585_v49, %v1550_v58  ;;  %v264_v20 = vperm.slane %v190_v23, %v1545_v57  ;;  %v259_v49 = vperm.slane %v181_v19, %v1556_v63 }
  0xb0   :  { %v256_v41 = vsel %vm223_vm1, %v255_v18, %v254_v16 }
  0xb3   :  { %1170 = vset.pattern.permute.xlu0 %v1213_v28  ;;  %v249_v28 = vsel %vm223_vm1, %v248_v3, %v247_v29 }
  0xb4   :  { %506 = vperm.xlu2 %1169, %v1250_v0   ;;  %503 = vperm.xlu1 %1168, %v1276_v5   ;;  %v1709_v2 = vpop.permute.xlu2 %341  ;;  %v261_v5 = vperm.slane %v1611_v61, %v1526_v53  ;;  %v252_v61 = vperm.slane %v1665_v59, %v1556_v63 }
  0xb5   :  { %500 = vperm.xlu0 %1170, %v1255_v1   ;;  %v199_v6 = vpop.permute.xlu1 %198  ;;  %v196_v25 = vpop.permute.xlu0 %195  ;;  %v257_v1 = vperm.slane %v178_v24, %v1545_v57 }
  0xb6   :  { %v263_v24 = vsel %vm223_vm1, %v262_v45, %v261_v5  ;;  %v266_v45 = vperm.slane %v1643_v50, %v1556_v63  ;;  %v276_v50 = vperm.slane %v1685_v26, %v1550_v58 }
  0xb7   :  { %v258_v23 = vsel %vm227_vm0, %v257_v1, %v256_v41 }
  0xb8   :  { %v260_v3 = vsel %vm231_vm2, %v259_v49, %v258_v23  ;;  %v427_v49 = vperm.slane %v1698_v22, %v1526_v53 }
  0xbc   :  { %512 = vperm.xlu2 %1169, %v1299_v9   ;;  %509 = vperm.xlu1 %1168, %v1271_v4   ;;  %v1718_v0 = vpop.permute.xlu2 %350  ;;  %v269_v9 = vperm.slane %v199_v6, %v1550_v58  ;;  %v268_v4 = vperm.slane %v196_v25, %v1526_v53  ;;  %v265_v25 = vsel %vm227_vm0, %v264_v20, %v263_v24 }
  0xbd   :  { %515 = vperm.xlu0 %1170, %v1294_v8   ;;  %v208_v21 = vpop.permute.xlu1 %207  ;;  %v205_v32 = vpop.permute.xlu0 %204  ;;  %v250_v8 = vperm.slane %v1553_v60, %v1545_v57  ;;  %v271_v60 = vperm.slane %v1663_v51, %v1545_v57  ;;  %v267_v1 = vsel %vm231_vm2, %v266_v45, %v265_v25  ;;  %v432_v25 = vperm.slane %v1709_v2, %v1556_v63 }
  0xbe   :  { %v270_v29 = vsel %vm223_vm1, %v269_v9, %v268_v4  ;;  %v273_v59 = vperm.slane %v205_v32, %v1556_v63  ;;  %v275_v19 = vperm.slane %v208_v21, %v1526_v53 }
  0xbf   :  { %v251_v6 = vsel %vm227_vm0, %v250_v8, %v249_v28  ;;  %v272_v51 = vsel %vm227_vm0, %v271_v60, %v270_v29 }
  0xc0   :  { %v253_v16 = vsel %vm231_vm2, %v252_v61, %v251_v6  ;;  %v277_v9 = vsel %vm223_vm1, %v276_v50, %v275_v19 }
  0xc1   :  { %v287_v18 = vsel %vm286_vm6, %v253_v16, %v1641_v27  ;;  %v437_v16 = vperm.slane %v1718_v0, %v1545_v57 }
  0xc2   :  { %v289_v26 = vsel %vm288_vm7, %v260_v3, %v287_v18 }
  0xc3   :  { %v291_v4 = vsel %vm290_vm8, %v267_v1, %v289_v26 }
  0xc4   :  { %659 = vperm.xlu2 %1169, %v1461_v36   ;;  %656 = vperm.xlu1 %1168, %v1433_v31   ;;  %v1751_v5 = vpop.permute.xlu2 %359  ;;  %v274_v36 = vsel %vm231_vm2, %v273_v59, %v272_v51 }
  0xc5   :  { %668 = vperm.xlu0 %1170, %v1481_v40   ;;  %v217_v21 = vpop.permute.xlu1 %216  ;;  %v214_v32 = vpop.permute.xlu0 %213  ;;  %v293_v28 = vsel %vm292_vm9, %v274_v36, %v291_v4 }
  0xc6   :  { %v280_v31 = vperm.slane %v217_v21, %v1556_v63  ;;  %v278_v20 = vperm.slane %v214_v32, %v1545_v57 }
  0xc8   :  { %v279_v40 = vsel %vm227_vm0, %v278_v20, %v277_v9 }
  0xc9   :  { %v281_v61 = vsel %vm231_vm2, %v280_v31, %v279_v40 }
  0xca   :  { %v295_v27 = vsel %vm294_vm10, %v281_v61, %v293_v28 }
  0xcb   :  { %298 = vst.msk [vmem:[#allocation2] sm:$0xff] %vm297_vm5, %v295_v27 }
  0xcc   :  { %662 = vperm.xlu2 %1169, %v1456_v35   ;;  %671 = vperm.xlu1 %1168, %v1476_v39   ;;  %v1773_v24 = vpop.permute.xlu2 %368 }
  0xcd   :  { %674 = vperm.xlu0 %1170, %v1471_v38   ;;  %v339_v8 = vpop.permute.xlu1 %338  ;;  %v336_v41 = vpop.permute.xlu0 %335 }
  0xce   :  { %v430_v23 = vperm.slane %v339_v8, %v1545_v57  ;;  %v428_v6 = vperm.slane %v336_v41, %v1550_v58  ;;  %v2253_v8 = vld [vmem:[#allocation28_spill] sm:$0xff]  ;;  %v2254_v41 = vld [vmem:[#allocation25_spill] sm:$0xff] }
  0xd0   :  { %v429_v35 = vsel %vm223_vm1, %v428_v6, %v427_v49 }
  0xd1   :  { %v431_v39 = vsel %vm227_vm0, %v430_v23, %v429_v35  ;;  %v2255_v23 = vld [vmem:[#allocation26_spill] sm:$0xff] }
  0xd2   :  { %v835_v29 = vld [vmem:[#allocation2] sm:$0xff]  ;;  %v433_v59 = vsel %vm231_vm2, %v432_v25, %v431_v39 }
  0xd3   :  { %1148 = vmatmul.msk.f32.vlgmr.msra.gmra.mxu0 %vm297_vm5, %v835_v29 }
  0xd4   :  { %683 = vperm.xlu2 %1169, %v1489_v42   ;;  %680 = vperm.xlu1 %1168, %v1494_v43   ;;  %v1788_v38 = vpop.permute.xlu2 %377 }
  0xd5   :  { %665 = vperm.xlu0 %1170, %v1451_v34   ;;  %v348_v22 = vpop.permute.xlu1 %347  ;;  %v345_v45 = vpop.permute.xlu0 %344  ;;  %v453_v35 = vperm.slane %v1788_v38, %v1556_v63 }
  0xd6   :  { %v435_v2 = vperm.slane %v348_v22, %v1550_v58  ;;  %v434_v60 = vperm.slane %v345_v45, %v1526_v53 }
  0xd8   :  { %v436_v19 = vsel %vm223_vm1, %v435_v2, %v434_v60 }
  0xd9   :  { %v438_v3 = vsel %vm227_vm0, %v437_v16, %v436_v19 }
  0xdc   :  { %686 = vperm.xlu2 %1169, %v1519_v48   ;;  %677 = vperm.xlu1 %1168, %v1499_v44   ;;  %v1799_v42 = vpop.permute.xlu2 %386  ;;  %v442_v44 = vperm.slane %v1751_v5, %v1550_v58 }
  0xdd   :  { %692 = vperm.xlu0 %1170, %v1509_v46   ;;  %v357_v34 = vpop.permute.xlu1 %356  ;;  %v354_v43 = vpop.permute.xlu0 %353  ;;  %v458_v39 = vperm.slane %v1799_v42, %v1545_v57 }
  0xde   :  { %v439_v50 = vperm.slane %v354_v43, %v1556_v63  ;;  %v441_v51 = vperm.slane %v357_v34, %v1526_v53 }
  0xe0   :  { %v440_v1 = vsel %vm231_vm2, %v439_v50, %v438_v3  ;;  %v443_v36 = vsel %vm223_vm1, %v442_v44, %v441_v51 }
  0xe1   :  { %v483_v0 = vsel %vm282_vm3, %v440_v1, %v433_v59 }
  0xe4   :  { %518 = vperm.xlu2 %1169, %v1289_v7   ;;  %695 = vperm.xlu1 %1168, %v1541_v56   ;;  %v1808_v48 = vpop.permute.xlu2 %395 }
  0xe5   :  { %521 = vperm.xlu0 %1170, %v1317_v12   ;;  %v366_v46 = vpop.permute.xlu1 %365  ;;  %v363_v21 = vpop.permute.xlu0 %362  ;;  %v463_v29 = vperm.slane %v1808_v48, %v1550_v58 }
  0xe6   :  { %v446_v32 = vperm.slane %v366_v46, %v1556_v63  ;;  %v444_v18 = vperm.slane %v363_v21, %v1545_v57  ;;  %v2256_v46 = vld [vmem:[#allocation10_spill] sm:$0xff]  ;;  %v2257_v21 = vld [vmem:[#allocation31_spill] sm:$0xff] }
  0xe8   :  { %v445_v31 = vsel %vm227_vm0, %v444_v18, %v443_v36 }
  0xe9   :  { %v447_v7 = vsel %vm231_vm2, %v446_v32, %v445_v31 }
  0xea   :  { %v1819_v56 = vsel %vm284_vm4, %v447_v7, %v483_v0  ;;  %v2258_v7 = vld [vmem:[#allocation13_spill] sm:$0xff] }
  0xec   :  { %698 = vperm.xlu2 %1169, %v1536_v55   ;;  %689 = vperm.xlu1 %1168, %v1514_v47   ;;  %v405_v12 = vpop.permute.xlu2 %404 }
  0xed   :  { %704 = vperm.xlu0 %1170, %v1575_v62   ;;  %v375_v5 = vpop.permute.xlu1 %374  ;;  %v372_v20 = vpop.permute.xlu0 %371  ;;  %v469_v49 = vperm.slane %v405_v12, %v1526_v53 }
  0xf4   :  { %524 = vperm.xlu2 %1169, %v1312_v11   ;;  %707 = vperm.xlu1 %1168, %v1570_v30   ;;  %v1826_v26 = vpop.permute.xlu2 %413 }
  0xf5   :  { %530 = vperm.xlu0 %1170, %v1335_v15   ;;  %v384_v9 = vpop.permute.xlu1 %383  ;;  %v381_v4 = vpop.permute.xlu0 %380  ;;  %v474_v0 = vperm.slane %v1826_v26, %v1556_v63 }
  0xf6   :  { %v456_v28 = vperm.slane %v384_v9, %v1550_v58  ;;  %v455_v61 = vperm.slane %v381_v4, %v1526_v53 }
  0xf8   :  { %v457_v2 = vsel %vm223_vm1, %v456_v28, %v455_v61 }
  0xf9   :  { %v459_v50 = vsel %vm227_vm0, %v458_v39, %v457_v2 }
  0xfc   :  { %701 = vperm.xlu2 %1169, %v1531_v54   ;;  %533 = vperm.xlu1 %1168, %v1330_v14   ;;  %v1831_v47 = vpop.permute.xlu2 %422  ;;  %v2252_v14 = vld [vmem:[#allocation9_spill] sm:$0xff] }
  0xfd   :  { %710 = vperm.xlu0 %1170, %v1563_v33   ;;  %v393_v55 = vpop.permute.xlu1 %392  ;;  %v390_v62 = vpop.permute.xlu0 %389  ;;  %v479_v32 = vperm.slane %v1831_v47, %v1545_v57 }
  0xfe   :  { %v462_v27 = vperm.slane %v393_v55, %v1526_v53  ;;  %v460_v60 = vperm.slane %v390_v62, %v1556_v63 }
 0x100   :  { %v464_v19 = vsel %vm223_vm1, %v463_v29, %v462_v27  ;;  %v461_v51 = vsel %vm231_vm2, %v460_v60, %v459_v50  ;;  %v2262_v27 = vld [vmem:[#allocation34_spill] sm:$0xff]  ;;  %v2265_v60 = vld [vmem:[#allocation15_spill] sm:$0xff] }
 0x104   :  { %719 = vperm.xlu2 %1169, %v1593_v37   ;;  %716 = vperm.xlu1 %1168, %v1599_v52   ;;  %v449_v37 = vperm.slane %v372_v20, %v1550_v58  ;;  %v448_v52 = vperm.slane %v1773_v24, %v1526_v53 }
 0x105   :  { %527 = vperm.xlu0 %1170, %v1307_v10   ;;  %v402_v11 = vpop.permute.xlu1 %401  ;;  %v399_v15 = vpop.permute.xlu0 %398  ;;  %v451_v10 = vperm.slane %v375_v5, %v1545_v57 }
 0x106   :  { %v1837_v30 = vpop.permute.xlu2 %497  ;;  %v465_v24 = vperm.slane %v399_v15, %v1545_v57  ;;  %v467_v38 = vperm.slane %v402_v11, %v1556_v63 }
 0x107   :  { %v590_v36 = vperm.slane %v1837_v30, %v1550_v58  ;;  %v2259_v30 = vld [vmem:[#allocation16_spill] sm:$0xff] }
 0x108   :  { %v466_v34 = vsel %vm227_vm0, %v465_v24, %v464_v19 }
 0x109   :  { %v468_v48 = vsel %vm231_vm2, %v467_v38, %v466_v34 }
 0x10c   :  { %542 = vperm.xlu2 %1169, %v1348_v17   ;;  %536 = vperm.xlu1 %1168, %v1325_v13   ;;  %v450_v13 = vsel %vm223_vm1, %v449_v37, %v448_v52 }
 0x10d   :  { %545 = vperm.xlu0 %1170, %v2252_v14   ;;  %v411_v54 = vpop.permute.xlu1 %410  ;;  %v408_v33 = vpop.permute.xlu0 %407  ;;  %v452_v45 = vsel %vm227_vm0, %v451_v10, %v450_v13  ;;  %v2260_v14 = vld [vmem:[#allocation11_spill] sm:$0xff] }
 0x10e   :  { %v1842_v40 = vpop.permute.xlu2 %506  ;;  %v470_v17 = vperm.slane %v408_v33, %v1550_v58  ;;  %v472_v59 = vperm.slane %v411_v54, %v1545_v57  ;;  %v454_v43 = vsel %vm231_vm2, %v453_v35, %v452_v45  ;;  %v2261_v54 = vld [vmem:[#allocation27_spill] sm:$0xff] }
 0x10f   :  { %v485_v18 = vsel %vm286_vm6, %v454_v43, %v1819_v56 }
 0x110   :  { %v471_v16 = vsel %vm223_vm1, %v470_v17, %v469_v49  ;;  %v486_v5 = vsel %vm288_vm7, %v461_v51, %v485_v18  ;;  %v2270_v51 = vld [vmem:[#allocation32_spill] sm:$0xff] }
 0x111   :  { %v473_v1 = vsel %vm227_vm0, %v472_v59, %v471_v16  ;;  %v487_v4 = vsel %vm290_vm8, %v468_v48, %v486_v5  ;;  %v2266_v16 = vld [vmem:[#allocation12_spill] sm:$0xff]  ;;  %v2273_v5 = vld [vmem:[#allocation21_spill] sm:$0xff] }
 0x112   :  { %v475_v31 = vsel %vm231_vm2, %v474_v0, %v473_v1  ;;  %v2268_v1 = vld [vmem:[#allocation29_spill] sm:$0xff]  ;;  %v2269_v0 = vld [vmem:[#allocation18_spill] sm:$0xff] }
 0x113   :  { %v488_v55 = vsel %vm292_vm9, %v475_v31, %v487_v4 }
 0x114   :  { %722 = vperm.xlu2 %1169, %v2253_v8   ;;  %713 = vperm.xlu1 %1168, %v2254_v41   ;;  %v2263_v8 = vld [vmem:[#allocation30_spill] sm:$0xff]  ;;  %v2264_v41 = vld [vmem:[#allocation33_spill] sm:$0xff] }
 0x115   :  { %728 = vperm.xlu0 %1170, %v2255_v23   ;;  %v420_v6 = vpop.permute.xlu1 %419  ;;  %v417_v25 = vpop.permute.xlu0 %416  ;;  %v596_v23 = vperm.slane %v1842_v40, %v1526_v53  ;;  %v2267_v40 = vld [vmem:[#allocation19_spill] sm:$0xff] }
 0x116   :  { %v513_v22 = vpop.permute.xlu2 %512  ;;  %v477_v3 = vperm.slane %v420_v6, %v1550_v58  ;;  %v476_v42 = vperm.slane %v417_v25, %v1526_v53 }
 0x117   :  { %v599_v35 = vperm.slane %v513_v22, %v1545_v57 }
 0x118   :  { %v478_v44 = vsel %vm223_vm1, %v477_v3, %v476_v42 }
 0x119   :  { %v480_v47 = vsel %vm227_vm0, %v479_v32, %v478_v44 }
 0x11c   :  { %539 = vperm.xlu2 %1169, %v2256_v46   ;;  %731 = vperm.xlu1 %1168, %v2257_v21  }
 0x11d   :  { %548 = vperm.xlu0 %1170, %v2258_v7   ;;  %v426_v12 = vpop.permute.xlu0 %425  ;;  %v2271_v7 = vld [vmem:[#allocation17_spill] sm:$0xff] }
 0x11e   :  { %v481_v20 = vperm.slane %v426_v12, %v1556_v63  ;;  %v660_v26 = vpop.permute.xlu2 %659  ;;  %v495_v9 = vpop.permute.xlu1 %494  ;;  %v2272_v12 = vld [vmem:[#allocation14_spill] sm:$0xff] }
 0x11f   :  { %v589_v56 = vperm.slane %v495_v9, %v1526_v53  ;;  %v752_v22 = vperm.slane %v660_v26, %v1550_v58 }
 0x120   :  { %v482_v62 = vsel %vm231_vm2, %v481_v20, %v480_v47 }
 0x121   :  { %v489_v11 = vsel %vm294_vm10, %v482_v62, %v488_v55  ;;  %v591_v15 = vsel %vm223_vm1, %v590_v36, %v589_v56 }
 0x122   :  { %492 = vst.msk [vmem:[#allocation2 + $0x10] sm:$0xff] %vm297_vm5, %v489_v11 }
 0x124   :  { %557 = vperm.xlu2 %1169, %v2259_v30   ;;  %554 = vperm.xlu1 %1168, %v2260_v14   ;;  %v2274_v30 = vld [vmem:[#allocation35_spill] sm:$0xff]  ;;  %v2275_v14 = vld [vmem:[#allocation20_spill] sm:$0xff] }
 0x125   :  { %725 = vperm.xlu0 %1170, %v2261_v54   ;;  %v2276_v54 = vld [vmem:[#allocation22_spill] sm:$0xff] }
 0x126   :  { %v663_v33 = vpop.permute.xlu2 %662  ;;  %v504_v37 = vpop.permute.xlu1 %503 }
 0x127   :  { %v594_v52 = vperm.slane %v504_v37, %v1556_v63  ;;  %v501_v10 = vpop.permute.xlu0 %500  ;;  %v754_v34 = vperm.slane %v663_v33, %v1545_v57 }
 0x128   :  { %v592_v28 = vperm.slane %v501_v10, %v1545_v57 }
 0x129   :  { %v837_v61 = vld [vmem:[#allocation2 + $0x10] sm:$0xff] }
 0x12a   :  { %v593_v17 = vsel %vm227_vm0, %v592_v28, %v591_v15  ;;  %1154 = vmatmul.msk.f32.vlgmr.msra.gmra.mxu2 %vm297_vm5, %v837_v61 }
 0x12b   :  { %v595_v13 = vsel %vm231_vm2, %v594_v52, %v593_v17  ;;  %v2277_v17 = vld [vmem:[#allocation23_spill] sm:$0xff] }
 0x12c   :  { %740 = vperm.xlu2 %1169, %v2262_v27   ;;  %734 = vperm.xlu1 %1168, %v2263_v8   ;;  %v2279_v27 = vmov 0  }
 0x12d   :  { %743 = vperm.xlu0 %1170, %v2264_v41  }
 0x12e   :  { %v684_v49 = vpop.permute.xlu2 %683  ;;  %v510_v24 = vpop.permute.xlu1 %509 }
 0x12f   :  { %v597_v6 = vperm.slane %v510_v24, %v1550_v58  ;;  %v516_v25 = vpop.permute.xlu0 %515  ;;  %v766_v9 = vperm.slane %v684_v49, %v1550_v58 }
 0x130   :  { %v601_v29 = vperm.slane %v516_v25, %v1556_v63 }
 0x131   :  { %v598_v39 = vsel %vm223_vm1, %v597_v6, %v596_v23 }
 0x132   :  { %v600_v59 = vsel %vm227_vm0, %v599_v35, %v598_v39 }
 0x133   :  { %v602_v45 = vsel %vm231_vm2, %v601_v29, %v600_v59 }
 0x134   :  { %v1922_v2 = vsel %vm282_vm3, %v602_v45, %v595_v13  ;;  %560 = vperm.xlu2 %1169, %v2265_v60   ;;  %551 = vperm.xlu1 %1168, %v2266_v16   ;;  %v2278_v13 = vld [vmem:[#allocation24_spill] sm:$0xff] }
 0x135   :  { %566 = vperm.xlu0 %1170, %v2267_v40  }
 0x136   :  { %v687_v19 = vpop.permute.xlu2 %686  ;;  %v657_v38 = vpop.permute.xlu1 %656 }
 0x137   :  { %v751_v3 = vperm.slane %v657_v38, %v1526_v53  ;;  %v669_v42 = vpop.permute.xlu0 %668  ;;  %v768_v56 = vperm.slane %v687_v19, %v1545_v57 }
 0x138   :  { %v758_v46 = vperm.slane %v669_v42, %v1526_v53 }
 0x139   :  { %v753_v43 = vsel %vm223_vm1, %v752_v22, %v751_v3 }
 0x13a   :  { %v755_v50 = vsel %vm227_vm0, %v754_v34, %v753_v43 }
 0x13c   :  { %737 = vperm.xlu2 %1169, %v2268_v1   ;;  %569 = vperm.xlu1 %1168, %v2269_v0  }
 0x13d   :  { %746 = vperm.xlu0 %1170, %v2270_v51  }
 0x13e   :  { %v519_v48 = vpop.permute.xlu2 %518  ;;  %v672_v44 = vpop.permute.xlu1 %671 }
 0x13f   :  { %v759_v21 = vperm.slane %v672_v44, %v1550_v58  ;;  %v675_v32 = vpop.permute.xlu0 %674  ;;  %v603_v6 = vperm.slane %v519_v48, %v1526_v53 }
 0x140   :  { %v761_v18 = vperm.slane %v675_v32, %v1545_v57 }
 0x141   :  { %v760_v36 = vsel %vm223_vm1, %v759_v21, %v758_v46  ;;  %v1983_v46 = vld [vmem:[%s2193_s3] sm:$0x3] }
 0x142   :  { %v762_v31 = vsel %vm227_vm0, %v761_v18, %v760_v36  ;;  %v839_v21 = vperm.slane %v1983_v46, 0 }
 0x144   :  { %572 = vperm.xlu2 %1169, %v2271_v7   ;;  %563 = vperm.xlu1 %1168, %v2272_v12  }
 0x145   :  { %578 = vperm.xlu0 %1170, %v2273_v5  }
 0x146   :  { %v699_v20 = vpop.permute.xlu2 %698  ;;  %v681_v26 = vpop.permute.xlu1 %680 }
 0x147   :  { %v765_v4 = vperm.slane %v681_v26, %v1526_v53  ;;  %v666_v47 = vpop.permute.xlu0 %665  ;;  %v775_v25 = vperm.slane %v699_v20, %v1545_v57 }
 0x148   :  { %v756_v55 = vperm.slane %v666_v47, %v1556_v63 }
 0x149   :  { %v767_v62 = vsel %vm223_vm1, %v766_v9, %v765_v4 }
 0x14a   :  { %v757_v11 = vsel %vm231_vm2, %v756_v55, %v755_v50  ;;  %v769_v15 = vsel %vm227_vm0, %v768_v56, %v767_v62 }
 0x14c   :  { %749 = vperm.xlu2 %1169, %v2274_v30   ;;  %581 = vperm.xlu1 %1168, %v2275_v14  }
 0x14d   :  { %575 = vperm.xlu0 %1170, %v2276_v54  }
 0x14e   :  { %v525_v33 = vpop.permute.xlu2 %524  ;;  %v678_v37 = vpop.permute.xlu1 %677 }
 0x14f   :  { %v763_v52 = vperm.slane %v678_v37, %v1556_v63  ;;  %v693_v10 = vpop.permute.xlu0 %692  ;;  %v606_v39 = vperm.slane %v525_v33, %v1545_v57 }
 0x150   :  { %v772_v49 = vperm.slane %v693_v10, %v1526_v53  ;;  %v867_v36 = vpop.f32.mrf.mxu0 }
 0x151   :  { %v764_v28 = vsel %vm231_vm2, %v763_v52, %v762_v31  ;;  %v1991_v20 = vadd.f32 %v867_v36, %v839_v21 }
 0x152   :  { %v807_v61 = vsel %vm282_vm3, %v764_v28, %v757_v11 }
 0x153   :  { %v951_v4 = vsel %vm950_vm11, %v1991_v20, -inf }
 0x154   :  { %587 = vperm.xlu2 %1169, %v2277_v17   ;;  %584 = vperm.xlu1 %1168, %v2278_v13  }
 0x155   :  { %1171 = vset.pattern.permute.xlu0 %v2279_v27 }
 0x156   :  { %v702_v8 = vpop.permute.xlu2 %701  ;;  %v696_v41 = vpop.permute.xlu1 %695 }
 0x157   :  { %v773_v24 = vperm.slane %v696_v41, %v1550_v58  ;;  %v522_v23 = vpop.permute.xlu0 %521  ;;  %v777_v29 = vperm.slane %v702_v8, %v1556_v63 }
 0x158   :  { %v604_v35 = vperm.slane %v522_v23, %v1550_v58 }
 0x159   :  { %v774_v59 = vsel %vm223_vm1, %v773_v24, %v772_v49 }
 0x15a   :  { %v776_v45 = vsel %vm227_vm0, %v775_v25, %v774_v59  ;;  %v605_v60 = vsel %vm223_vm1, %v604_v35, %v603_v6 }
 0x15b   :  { %v778_v16 = vsel %vm231_vm2, %v777_v29, %v776_v45  ;;  %v607_v40 = vsel %vm227_vm0, %v606_v39, %v605_v60  ;;  %v833_v29 = vld [vmem:[%s2192_s2 + $0x18] sm:$0xff] }
 0x15c   :  { %1173 = vset.pattern.permute.xlu2 %v2279_v27  ;;  %1172 = vset.pattern.permute.xlu1 %v2279_v27 }
 0x15d   :  { %1155 = vmatpush.xpose.msk.msra.mxu3 %vm297_vm5, %v833_v29  ;;  %1149 = vmatpush.xpose.msk.msra.mxu1 %vm297_vm5, %v833_v29 }
 0x15e   :  { %v720_v19 = vpop.permute.xlu2 %719  ;;  %v690_v38 = vpop.permute.xlu1 %689 }
 0x15f   :  { %v770_v22 = vperm.slane %v690_v38, %v1556_v63  ;;  %v705_v3 = vpop.permute.xlu0 %704  ;;  %v787_v39 = vperm.slane %v720_v19, %v1550_v58  ;;  %v832_v19 = vld [vmem:[%s2192_s2 + $0x10] sm:$0xff] }
 0x160   :  { %v779_v0 = vperm.slane %v705_v3, %v1526_v53 }
 0x161   :  { %v771_v42 = vsel %vm231_vm2, %v770_v22, %v769_v15  ;;  %1156 = vmatpush.xpose.msk.msra.mxu3 %vm297_vm5, %v832_v19  ;;  %1150 = vmatpush.xpose.msk.msra.mxu1 %vm297_vm5, %v832_v19 }
 0x162   :  { %v808_v34 = vsel %vm284_vm4, %v771_v42, %v807_v61 }
 0x163   :  { %v809_v43 = vsel %vm286_vm6, %v778_v16, %v808_v34 }
 0x166   :  { %v543_v50 = vpop.permute.xlu2 %542  ;;  %v708_v1 = vpop.permute.xlu1 %707 }
 0x167   :  { %v780_v51 = vperm.slane %v708_v1, %v1550_v58  ;;  %v531_v48 = vpop.permute.xlu0 %530  ;;  %v617_v54 = vperm.slane %v543_v50, %v1526_v53 }
 0x168   :  { %v610_v31 = vperm.slane %v531_v48, %v1526_v53 }
 0x169   :  { %v781_v44 = vsel %vm223_vm1, %v780_v51, %v779_v0 }
 0x16e   :  { %v723_v32 = vpop.permute.xlu2 %722  ;;  %v534_v18 = vpop.permute.xlu1 %533 }
 0x16f   :  { %v611_v7 = vperm.slane %v534_v18, %v1550_v58  ;;  %v711_v12 = vpop.permute.xlu0 %710  ;;  %v789_v60 = vperm.slane %v723_v32, %v1545_v57 }
 0x170   :  { %v782_v61 = vperm.slane %v711_v12, %v1545_v57 }
 0x171   :  { %v612_v5 = vsel %vm223_vm1, %v611_v7, %v610_v31 }
 0x172   :  { %v783_v41 = vsel %vm227_vm0, %v782_v61, %v781_v44  ;;  %v1214_v61 = vmov -inf  }
 0x173   :  { %818 = vst.msk [vmem:[#allocation3] sm:$0xff] %vm817_vm12, %v1214_v61 }
 0x174   :  { %819 = vst.msk [vmem:[#allocation3 + $0x8] sm:$0xff] %vm817_vm12, %v1214_v61 }
 0x175   :  { %820 = vst.msk [vmem:[#allocation3 + $0x10] sm:$0xff] %vm817_vm12, %v1214_v61 }
 0x176   :  { %v540_v26 = vpop.permute.xlu2 %539  ;;  %v717_v9 = vpop.permute.xlu1 %716  ;;  %821 = vst.msk [vmem:[#allocation3 + $0x18] sm:$0xff] %vm817_vm12, %v1214_v61 }
 0x177   :  { %952 = vmax.xlane.f32.xlu0 %v951_v4  ;;  %v528_v47 = vpop.permute.xlu0 %527  ;;  %v615_v33 = vperm.slane %v540_v26, %v1556_v63  ;;  %v786_v35 = vperm.slane %v717_v9, %v1526_v53 }
 0x178   :  { %v608_v56 = vperm.slane %v528_v47, %v1556_v63 }
 0x179   :  { %v788_v59 = vsel %vm223_vm1, %v787_v39, %v786_v35 }
 0x17a   :  { %v609_v55 = vsel %vm231_vm2, %v608_v56, %v607_v40  ;;  %v790_v38 = vsel %vm227_vm0, %v789_v60, %v788_v59 }
 0x17b   :  { %v646_v62 = vsel %vm284_vm4, %v609_v55, %v1922_v2 }
 0x17e   :  { %v1999_v11 = vpop.permute.xlu2 %557  ;;  %v537_v15 = vpop.permute.xlu1 %536 }
 0x17f   :  { %v613_v30 = vperm.slane %v537_v15, %v1545_v57  ;;  %v546_v14 = vpop.permute.xlu0 %545 }
 0x180   :  { %v618_v37 = vperm.slane %v546_v14, %v1550_v58 }
 0x181   :  { %v614_v52 = vsel %vm227_vm0, %v613_v30, %v612_v5 }
 0x182   :  { %v616_v10 = vsel %vm231_vm2, %v615_v33, %v614_v52  ;;  %v619_v28 = vsel %vm223_vm1, %v618_v37, %v617_v54 }
 0x183   :  { %v647_v2 = vsel %vm286_vm6, %v616_v10, %v646_v62 }
 0x186   :  { %v741_v17 = vpop.permute.xlu2 %740  ;;  %v714_v13 = vpop.permute.xlu1 %713 }
 0x187   :  { %v784_v27 = vperm.slane %v714_v13, %v1556_v63  ;;  %v729_v8 = vpop.permute.xlu0 %728  ;;  %v800_v62 = vperm.slane %v741_v17, %v1526_v53 }
 0x188   :  { %v793_v31 = vperm.slane %v729_v8, %v1526_v53 }
 0x189   :  { %v785_v49 = vsel %vm231_vm2, %v784_v27, %v783_v41 }
 0x18a   :  { %v810_v24 = vsel %vm288_vm7, %v785_v49, %v809_v43  ;;  %v625_v49 = vperm.slane %v1999_v11, %v1550_v58 }
 0x18e   :  { %v732_v23 = vpop.permute.xlu1 %731  ;;  %v2014_v25 = vpop.permute.xlu2 %560 }
 0x18f   :  { %v549_v6 = vpop.permute.xlu0 %548  ;;  %v794_v44 = vperm.slane %v732_v23, %v1550_v58  ;;  %v627_v39 = vperm.slane %v2014_v25, %v1545_v57 }
 0x190   :  { %v620_v50 = vperm.slane %v549_v6, %v1545_v57 }
 0x191   :  { %v795_v12 = vsel %vm223_vm1, %v794_v44, %v793_v31 }
 0x192   :  { %v621_v32 = vsel %vm227_vm0, %v620_v50, %v619_v28 }
 0x196   :  { %v2022_v45 = vpop.permute.xlu1 %554  ;;  %v738_v22 = vpop.permute.xlu2 %737 }
 0x197   :  { %v726_v16 = vpop.permute.xlu0 %725  ;;  %v798_v4 = vperm.slane %v738_v22, %v1556_v63  ;;  %v624_v27 = vperm.slane %v2022_v45, %v1526_v53 }
 0x198   :  { %v791_v40 = vperm.slane %v726_v16, %v1556_v63 }
 0x199   :  { %v626_v6 = vsel %vm223_vm1, %v625_v49, %v624_v27 }
 0x19a   :  { %v792_v3 = vsel %vm231_vm2, %v791_v40, %v790_v38  ;;  %v628_v11 = vsel %vm227_vm0, %v627_v39, %v626_v6 }
 0x19b   :  { %v811_v42 = vsel %vm290_vm8, %v792_v3, %v810_v24 }
 0x19e   :  { %v735_v34 = vpop.permute.xlu1 %734  ;;  %v573_v1 = vpop.permute.xlu2 %572 }
 0x19f   :  { %v744_v43 = vpop.permute.xlu0 %743  ;;  %v796_v18 = vperm.slane %v735_v34, %v1545_v57  ;;  %v634_v45 = vperm.slane %v573_v1, %v1545_v57 }
 0x1a0   :  { %v801_v26 = vperm.slane %v744_v43, %v1550_v58 }
 0x1a1   :  { %v797_v5 = vsel %vm227_vm0, %v796_v18, %v795_v12  ;;  %v948_v18 = vld [vmem:[#allocation3 + $0x10] sm:$0xff]  ;;  %v870_v12 = vperm.slane %v1983_v46, 1 }
 0x1a2   :  { %v799_v30 = vsel %vm231_vm2, %v798_v4, %v797_v5  ;;  %v802_v33 = vsel %vm223_vm1, %v801_v26, %v800_v62  ;;  %v21_v62 = vld [vmem:[%s2194_s4] sm:$0xff] }
 0x1a6   :  { %v552_v0 = vpop.permute.xlu1 %551  ;;  %v750_v47 = vpop.permute.xlu2 %749 }
 0x1a7   :  { %v622_v51 = vperm.slane %v552_v0, %v1556_v63  ;;  %v567_v48 = vpop.permute.xlu0 %566  ;;  %v805_v37 = vperm.slane %v750_v47, %v1556_v63 }
 0x1a8   :  { %v631_v23 = vperm.slane %v567_v48, %v1526_v53 }
 0x1a9   :  { %v623_v36 = vsel %vm231_vm2, %v622_v51, %v621_v32  ;;  %v1215_v51 = vmov 0.0  }
 0x1aa   :  { %v648_v7 = vsel %vm288_vm7, %v623_v36, %v647_v2  ;;  %824 = vst.msk [vmem:[#allocation4 + $0x10] sm:$0xff] %vm817_vm12, %v1215_v51 }
 0x1ab   :  { %822 = vst.msk [vmem:[#allocation4] sm:$0xff] %vm817_vm12, %v1215_v51 }
 0x1ac   :  { %823 = vst.msk [vmem:[#allocation4 + $0x8] sm:$0xff] %vm817_vm12, %v1215_v51 }
 0x1ad   :  { %v920_v9 = vpop.f32.mrf.mxu2  ;;  %825 = vst.msk [vmem:[#allocation4 + $0x18] sm:$0xff] %vm817_vm12, %v1215_v51 }
 0x1ae   :  { %v2050_v56 = vadd.f32 %v920_v9, %v839_v21  ;;  %v570_v55 = vpop.permute.xlu1 %569  ;;  %v812_v21 = vsel %vm292_vm9, %v799_v30, %v811_v42  ;;  %v588_v16 = vpop.permute.xlu2 %587  ;;  %826 = vst.msk [vmem:[#allocation5] sm:$0xff] %vm817_vm12, %v1215_v51 }
 0x1af   :  { %v747_v15 = vpop.permute.xlu0 %746  ;;  %v632_v41 = vperm.slane %v570_v55, %v1550_v58  ;;  %v643_v42 = vperm.slane %v588_v16, %v1556_v63  ;;  %827 = vst.msk [vmem:[#allocation5 + $0x8] sm:$0xff] %vm817_vm12, %v1215_v51 }
 0x1b0   :  { %v803_v14 = vperm.slane %v747_v15, %v1545_v57  ;;  %v957_v54 = vsel %vm950_vm11, %v2050_v56, -inf  ;;  %828 = vst.msk [vmem:[#allocation5 + $0x10] sm:$0xff] %vm817_vm12, %v1215_v51  ;;  %v2126_v15 = vld [vmem:[#allocation3 + $0x18] sm:$0xff] }
 0x1b1   :  { %958 = vmax.xlane.f32.xlu2 %v957_v54  ;;  %v633_v29 = vsel %vm223_vm1, %v632_v41, %v631_v23  ;;  %829 = vst.msk [vmem:[#allocation5 + $0x18] sm:$0xff] %vm817_vm12, %v1215_v51  ;;  %v981_v39 = vld [vmem:[#allocation4 + $0x10] sm:$0xff] }
 0x1b2   :  { %v804_v52 = vsel %vm227_vm0, %v803_v14, %v802_v33  ;;  %v635_v19 = vsel %vm227_vm0, %v634_v45, %v633_v29 }
 0x1b3   :  { %v806_v10 = vsel %vm231_vm2, %v805_v37, %v804_v52  ;;  %v2136_v52 = vld [vmem:[#allocation3 + $0x8] sm:$0xff] }
 0x1b4   :  { %v813_v28 = vsel %vm294_vm10, %v806_v10, %v812_v21 }
 0x1b5   :  { %816 = vst.msk [vmem:[#allocation2 + $0x18] sm:$0xff] %vm297_vm5, %v813_v28 }
 0x1b6   :  { %v564_v2 = vpop.permute.xlu1 %563 }
 0x1b7   :  { %v579_v17 = vpop.permute.xlu0 %578  ;;  %v629_v35 = vperm.slane %v564_v2, %v1556_v63 }
 0x1b8   :  { %v638_v38 = vperm.slane %v579_v17, %v1526_v53 }
 0x1b9   :  { %v630_v40 = vsel %vm231_vm2, %v629_v35, %v628_v11 }
 0x1bc   :  { %v838_v13 = vld [vmem:[#allocation2 + $0x18] sm:$0xff] }
 0x1bd   :  { %1157 = vmatmul.msk.f32.vlgmr.msra.gmra.mxu3 %vm297_vm5, %v838_v13 }
 0x1be   :  { %v582_v8 = vpop.permute.xlu1 %581 }
 0x1bf   :  { %v576_v24 = vpop.permute.xlu0 %575  ;;  %v639_v60 = vperm.slane %v582_v8, %v1550_v58  ;;  %v649_v58 = vsel %vm290_vm8, %v630_v40, %v648_v7 }
 0x1c0   :  { %v636_v59 = vperm.slane %v576_v24, %v1556_v63  ;;  %v2106_v63 = vld [vmem:[#allocation3] sm:$0xff] }
 0x1c1   :  { %v640_v34 = vsel %vm223_vm1, %v639_v60, %v638_v38  ;;  %v1054_v38 = vld [vmem:[#allocation5 + $0x8] sm:$0xff] }
 0x1c2   :  { %v637_v25 = vsel %vm231_vm2, %v636_v59, %v635_v19 }
 0x1c3   :  { %v650_v50 = vsel %vm292_vm9, %v637_v25, %v649_v58 }
 0x1c6   :  { %v585_v22 = vpop.permute.xlu1 %584 }
 0x1c7   :  { %v641_v3 = vperm.slane %v585_v22, %v1545_v57 }
 0x1c9   :  { %v642_v43 = vsel %vm227_vm0, %v641_v3, %v640_v34 }
 0x1ca   :  { %v644_v1 = vsel %vm231_vm2, %v643_v42, %v642_v43 }
 0x1cb   :  { %v651_v0 = vsel %vm294_vm10, %v644_v1, %v650_v50 }
 0x1cc   :  { %654 = vst.msk [vmem:[#allocation2 + $0x8] sm:$0xff] %vm297_vm5, %v651_v0 }
 0x1d3   :  { %v836_v57 = vld [vmem:[#allocation2 + $0x8] sm:$0xff] }
 0x1d4   :  { %1151 = vmatmul.msk.f32.vlgmr.msra.gmra.mxu1 %vm297_vm5, %v836_v57 }
 0x1ea   :  { %v953_v48 = vpop.xlane.xlu0 %952 }
 0x1eb   :  { %v2109_v44 = vmax.f32 %v2106_v63, %v953_v48 }
 0x1ed   :  { %v967_v32 = vsub.f32 %v2106_v63, %v2109_v44  ;;  %1040 = vst.msk [vmem:[#allocation3] sm:$0xff] %vm817_vm12, %v2109_v44  ;;  %989 = vperm.xlu0 %1171, %v2109_v44  }
 0x224   :  { %v959_v36 = vpop.xlane.xlu2 %958 }
 0x225   :  { %v965_v31 = vmax.f32 %v948_v18, %v959_v36  ;;  %v979_v36 = vld [vmem:[#allocation4] sm:$0xff] }
 0x227   :  { %v969_v7 = vsub.f32 %v948_v18, %v965_v31  ;;  %1042 = vst.msk [vmem:[#allocation3 + $0x10] sm:$0xff] %vm817_vm12, %v965_v31 }
 0x229   :  { %v975_v6 = vmul.f32 1.442695, %v969_v7 }
 0x240   :  { %v943_v5 = vpop.f32.mrf.mxu3 }
 0x241   :  { %v2118_v26 = vadd.f32 %v943_v5, %v870_v12 }
 0x243   :  { %v960_v9 = vsel %vm950_vm11, %v2118_v26, -inf }
 0x244   :  { %961 = vmax.xlane.f32.xlu2 %v960_v9 }
 0x251   :  { %v897_v4 = vpop.f32.mrf.mxu1 }
 0x252   :  { %v898_v47 = vadd.f32 %v897_v4, %v870_v12  ;;  %v982_v4 = vld [vmem:[#allocation4 + $0x18] sm:$0xff] }
 0x254   :  { %v954_v55 = vsel %vm950_vm11, %v898_v47, -inf }
 0x255   :  { %955 = vmax.xlane.f32.xlu1 %v954_v55  ;;  %v1053_v55 = vld [vmem:[#allocation5] sm:$0xff] }
 0x25c   :  { %999 = vperm.xlu2 %1173, %v965_v31  }
 0x25f   :  { %v990_v8 = vpop.permute.xlu0 %989 }
 0x260   :  { %v1007_v41 = vsub.f32 %v1991_v20, %v990_v8 }
 0x262   :  { %v1011_v49 = vmul.f32 1.442695, %v1007_v41 }
 0x264   :  { %1050 = vperm.xlu2 %1173, %v21_v62  }
 0x2b7   :  { %v962_v46 = vpop.xlane.xlu2 %961 }
 0x2b8   :  { %v2129_v30 = vmax.f32 %v2126_v15, %v962_v46 }
 0x2ba   :  { %v970_v14 = vsub.f32 %v2126_v15, %v2129_v30  ;;  %1043 = vst.msk [vmem:[#allocation3 + $0x18] sm:$0xff] %vm817_vm12, %v2129_v30 }
 0x2bc   :  { %v977_v12 = vmul.f32 1.442695, %v970_v14 }
 0x2bf   :  { %v1000_v54 = vpop.permute.xlu2 %999 }
 0x2c0   :  { %v1009_v33 = vsub.f32 %v2050_v56, %v1000_v54 }
 0x2c2   :  { %v1015_v37 = vmul.f32 1.442695, %v1009_v33 }
 0x2c4   :  { %1174 = vpow2.f32 %v1015_v37 }
 0x2c5   :  { %1176 = vpow2.f32 %v1011_v49 }
 0x2c6   :  { %1178 = vpow2.f32 %v975_v6 }
 0x2c7   :  { %v1051_v2 = vpop.permute.xlu2 %1050 }
 0x2c8   :  { %v956_v21 = vpop.xlane.xlu1 %955  ;;  %vm1052_vm13 = vcmp.eq.s32.totalorder %v1526_v53, %v1051_v2 }
 0x2c9   :  { %v2139_v10 = vmax.f32 %v2136_v52, %v956_v21  ;;  %v1058_v13 = vsel %vm1052_vm13, %v898_v47, 0.0  ;;  %v1057_v58 = vsel %vm1052_vm13, %v1991_v20, 0.0  ;;  %v1059_v0 = vsel %vm1052_vm13, %v2050_v56, 0.0  ;;  %v1056_v21 = vld [vmem:[#allocation5 + $0x18] sm:$0xff] }
 0x2ca   :  { %v1175_v28 = vpop.eup %1174  ;;  %v1064_v27 = vsel %vm950_vm11, %v1058_v13, 0.0  ;;  %v1061_v1 = vsel %vm950_vm11, %v1057_v58, 0.0  ;;  %v1060_v51 = vsel %vm1052_vm13, %v2118_v26, 0.0  ;;  %v1067_v57 = vsel %vm950_vm11, %v1059_v0, 0.0 }
 0x2cb   :  { %v968_v61 = vsub.f32 %v2136_v52, %v2139_v10  ;;  %1041 = vst.msk [vmem:[#allocation3 + $0x8] sm:$0xff] %vm817_vm12, %v2139_v10  ;;  %994 = vperm.xlu1 %1172, %v2139_v10   ;;  %v1025_v17 = vsel %vm950_vm11, %v1175_v28, 0.0  ;;  %v1177_v24 = vpop.eup %1176  ;;  %v1070_v48 = vsel %vm950_vm11, %v1060_v51, 0.0  ;;  %v971_v20 = vmul.f32 1.442695, %v967_v32  ;;  %v1055_v52 = vld [vmem:[#allocation5 + $0x10] sm:$0xff] }
 0x2cc   :  { %1026 = vadd.xlane.f32.xlu0 %v1025_v17  ;;  %v1019_v23 = vsel %vm950_vm11, %v1177_v24, 0.0  ;;  %v1179_v35 = vpop.eup %1178  ;;  %v1084_v24 = vld [vmem:[#allocation3] sm:$0xff] }
 0x2cd   :  { %v985_v45 = vmul.f32 %v1179_v35, %v981_v39  ;;  %v973_v53 = vmul.f32 1.442695, %v968_v61 }
 0x2d2   :  { %v1085_v49 = vld [vmem:[#allocation3 + $0x8] sm:$0xff] }
 0x2d3   :  { %1004 = vperm.xlu1 %1172, %v2129_v30  }
 0x2d4   :  { %1065 = vadd.xlane.f32.xlu0 %v1064_v27 }
 0x2fd   :  { %1020 = vadd.xlane.f32.xlu1 %v1019_v23 }
 0x33d   :  { %v995_v29 = vpop.permute.xlu1 %994 }
 0x33e   :  { %v1008_v59 = vsub.f32 %v898_v47, %v995_v29 }
 0x33f   :  { %v1027_v60 = vpop.xlane.xlu0 %1026 }
 0x340   :  { %v1013_v16 = vmul.f32 1.442695, %v1008_v59  ;;  %v1033_v11 = vadd.f32 %v1027_v60, %v985_v45  ;;  %v1086_v60 = vld [vmem:[#allocation3 + $0x10] sm:$0xff] }
 0x342   :  { %1180 = vpow2.f32 %v1013_v16  ;;  %1038 = vst.msk [vmem:[#allocation4 + $0x10] sm:$0xff] %vm817_vm12, %v1033_v11 }
 0x345   :  { %v1005_v40 = vpop.permute.xlu1 %1004 }
 0x346   :  { %v1010_v19 = vsub.f32 %v2118_v26, %v1005_v40  ;;  %v980_v26 = vld [vmem:[#allocation4 + $0x8] sm:$0xff] }
 0x347   :  { %v1066_v22 = vpop.xlane.xlu0 %1065 }
 0x348   :  { %v1181_v25 = vpop.eup %1180  ;;  %v1017_v3 = vmul.f32 1.442695, %v1010_v19  ;;  %v1074_v42 = vadd.f32 %v1066_v22, %v1054_v38  ;;  %v1087_v22 = vld [vmem:[#allocation3 + $0x18] sm:$0xff] }
 0x349   :  { %v1022_v34 = vsel %vm950_vm11, %v1181_v25, 0.0  ;;  %v1090_v15 = vld [vmem:[#allocation4 + $0x10] sm:$0xff] }
 0x34a   :  { %1182 = vpow2.f32 %v1017_v3  ;;  %1078 = vst.msk [vmem:[#allocation5 + $0x8] sm:$0xff] %vm817_vm12, %v1074_v42  ;;  %1023 = vadd.xlane.f32.xlu2 %v1022_v34 }
 0x34b   :  { %1184 = vpow2.f32 %v971_v20 }
 0x34c   :  { %1186 = vpow2.f32 %v973_v53 }
 0x34d   :  { %1188 = vpow2.f32 %v977_v12 }
 0x350   :  { %v1183_v43 = vpop.eup %1182 }
 0x351   :  { %v1028_v50 = vsel %vm950_vm11, %v1183_v43, 0.0  ;;  %v1185_v18 = vpop.eup %1184  ;;  %v1105_v29 = vld [vmem:[#allocation5 + $0x8] sm:$0xff] }
 0x352   :  { %1029 = vadd.xlane.f32.xlu1 %v1028_v50  ;;  %1062 = vadd.xlane.f32.xlu2 %v1061_v1  ;;  %v983_v31 = vmul.f32 %v1185_v18, %v979_v36  ;;  %v1187_v5 = vpop.eup %1186 }
 0x353   :  { %v984_v9 = vmul.f32 %v1187_v5, %v980_v26  ;;  %v1189_v32 = vpop.eup %1188 }
 0x354   :  { %v986_v62 = vmul.f32 %v1189_v32, %v982_v4 }
 0x35a   :  { %1068 = vadd.xlane.f32.xlu1 %v1067_v57  ;;  %1071 = vadd.xlane.f32.xlu2 %v1070_v48 }
 0x370   :  { %v1021_v7 = vpop.xlane.xlu1 %1020 }
 0x371   :  { %v1031_v56 = vadd.f32 %v1021_v7, %v983_v31 }
 0x373   :  { %1036 = vst.msk [vmem:[#allocation4] sm:$0xff] %vm817_vm12, %v1031_v56 }
 0x37a   :  { %v1088_v47 = vld [vmem:[#allocation4] sm:$0xff] }
 0x37b   :  { %1190 = vlog2.f32 %v1088_v47 }
 0x381   :  { %v1191_v14 = vpop.eup %1190 }
 0x382   :  { %v1093_v13 = vmul.f32 0.6931472, %v1191_v14 }
 0x384   :  { %v1100_v39 = vadd.f32 %v1093_v13, %v1084_v24 }
 0x3bd   :  { %v1024_v63 = vpop.xlane.xlu2 %1023 }
 0x3be   :  { %v1032_v44 = vadd.f32 %v1024_v63, %v984_v9 }
 0x3c0   :  { %1037 = vst.msk [vmem:[#allocation4 + $0x8] sm:$0xff] %vm817_vm12, %v1032_v44 }
 0x3c5   :  { %v1030_v46 = vpop.xlane.xlu1 %1029  ;;  %v1063_v54 = vpop.xlane.xlu2 %1062 }
 0x3c6   :  { %v1034_v33 = vadd.f32 %v1030_v46, %v986_v62  ;;  %v1073_v37 = vadd.f32 %v1063_v54, %v1053_v55 }
 0x3c7   :  { %v1089_v30 = vld [vmem:[#allocation4 + $0x8] sm:$0xff] }
 0x3c8   :  { %1039 = vst.msk [vmem:[#allocation4 + $0x18] sm:$0xff] %vm817_vm12, %v1034_v33  ;;  %1192 = vlog2.f32 %v1089_v30 }
 0x3c9   :  { %1077 = vst.msk [vmem:[#allocation5] sm:$0xff] %vm817_vm12, %v1073_v37  ;;  %1194 = vlog2.f32 %v1090_v15 }
 0x3cd   :  { %v1069_v10 = vpop.xlane.xlu1 %1068  ;;  %v1072_v28 = vpop.xlane.xlu2 %1071 }
 0x3ce   :  { %v1193_v2 = vpop.eup %1192  ;;  %v1075_v61 = vadd.f32 %v1069_v10, %v1055_v52  ;;  %v1076_v17 = vadd.f32 %v1072_v28, %v1056_v21 }
 0x3cf   :  { %v1195_v27 = vpop.eup %1194  ;;  %v1091_v8 = vld [vmem:[#allocation4 + $0x18] sm:$0xff]  ;;  %v1095_v41 = vmul.f32 0.6931472, %v1193_v2 }
 0x3d0   :  { %1079 = vst.msk [vmem:[#allocation5 + $0x10] sm:$0xff] %vm817_vm12, %v1075_v61  ;;  %1196 = vlog2.f32 %v1091_v8  ;;  %v1104_v6 = vld [vmem:[#allocation5] sm:$0xff]  ;;  %v1097_v35 = vmul.f32 0.6931472, %v1195_v27 }
 0x3d1   :  { %1080 = vst.msk [vmem:[#allocation5 + $0x18] sm:$0xff] %vm817_vm12, %v1076_v17  ;;  %v1101_v23 = vadd.f32 %v1095_v41, %v1085_v49  ;;  %v1108_v45 = vsub.f32 %v1100_v39, %v1104_v6 }
 0x3d2   :  { %v1102_v11 = vadd.f32 %v1097_v35, %v1086_v60 }
 0x3d3   :  { %v1109_v59 = vsub.f32 %v1101_v23, %v1105_v29  ;;  %v1112_v3 = vsel %vm817_vm12, %v1108_v45, 0.0 }
 0x3d5   :  { %v1113_v40 = vsel %vm817_vm12, %v1109_v59, 0.0 }
 0x3d6   :  { %v1197_v16 = vpop.eup %1196  ;;  %v1114_v34 = vadd.f32 %v1113_v40, %v1112_v3 }
 0x3d7   :  { %v1099_v38 = vmul.f32 0.6931472, %v1197_v16  ;;  %v1106_v19 = vld [vmem:[#allocation5 + $0x10] sm:$0xff] }
 0x3d8   :  { %v1110_v25 = vsub.f32 %v1102_v11, %v1106_v19  ;;  %v1107_v58 = vld [vmem:[#allocation5 + $0x18] sm:$0xff] }
 0x3d9   :  { %v1103_v42 = vadd.f32 %v1099_v38, %v1087_v22 }
 0x3da   :  { %v1115_v43 = vsel %vm817_vm12, %v1110_v25, 0.0 }
 0x3db   :  { %v1111_v50 = vsub.f32 %v1103_v42, %v1107_v58  ;;  %v1116_v1 = vadd.f32 %v1115_v43, %v1114_v34 }
 0x3dd   :  { %v1117_v0 = vsel %vm817_vm12, %v1111_v50, 0.0 }
 0x3de   :  { %v1118_v51 = vadd.f32 %v1117_v0, %v1116_v1 }
 0x3e0   :  { %1119 = vadd.xlane.f32.xlu0 %v1118_v51 }
 0x453   :  { %v1120_v57 = vpop.xlane.xlu0 %1119 }
 0x454   :  { %v1121_v48 = vrot.slane %v1120_v57, 4 }
 0x456   :  { %v1122_v20 = vadd.f32 %v1121_v48, %v1120_v57 }
 0x458   :  { %v1123_v18 = vrot.slane %v1122_v20, 2 }
 0x45a   :  { %v1124_v36 = vadd.f32 %v1123_v18, %v1122_v20 }
 0x45c   :  { %v1125_v31 = vrot.slane %v1124_v36, 1 }
 0x45e   :  { %v1126_v7 = vadd.f32 %v1125_v31, %v1124_v36 }
 0x460   :  { %1158 = vpush %v1126_v7 }
 0x491   :  { %s1159_s29 = spop %1158 }
 0x492   :  { %s1128_s30 = smul.f32 0.0625, %s1159_s29 }
 0x494   :  { %1130 = sst [smem:[#allocation6]] %s1128_s30 }
 0x495   :  { %1139 = dma.smem_to_hbm %s1216_s6, 16, %s1137_s28, [#allocation7]  }
 0x496   :  { %1210 = dma.done.wait [#allocation7], 16  }
 0x497   :  { %1211 = vsyncadd [#allocation7], 4294967280 }
 0x498   :  { %1144 = sfence }
 0x499   :  { %1145 = vsyncpa [#allocation7], 1 }

</bundles_post_ra>
